<compile_context>
chip_gen: v7x
topology: tpu7x:2x2x1
jax: 0.10.0
libtpu: 0.0.40
codegen_flags: <defaults>
</compile_context>

<pallas_src>
import functools

import jax
import jax.numpy as jnp
from jax.experimental import pallas as pl
from jax.experimental.pallas import tpu as pltpu

_LANE = 128


def _round_up(a, b):
    return (a + b - 1) // b * b


def _gaussian_emb_kernel(x_ref, o_ref, *, C, W, k):
    # x_ref block: (W, C, ts, 128) in SOURCE layout, xw[w, c] = x[n, c, w, t, v, m].
    # o_ref block: (Ck*Ck, ts, 128) flattened embedding matrices (row-major i,j).
    xw = x_ref[...].astype(jnp.float32)                          # (W, C, ts, 128)

    # Virtual torch-view rows: xv[i][j] == x_view[b, i, j]  (each a (ts,128) tile).
    xv = [[xw[(i * W + j) // C, (i * W + j) % C] for j in range(W)]
          for i in range(C)]

    # Per-row mean over the W "window" axis of the view.
    inv_w = 1.0 / float(W)
    mu = []
    for i in range(C):
        acc = xv[i][0]
        for j in range(1, W):
            acc = acc + xv[i][j]
        mu.append(acc * inv_w)

    # Covariance (symmetric, unrolled), streaming over j to keep VMEM pressure low.
    cov = [[None] * C for _ in range(C)]
    for j in range(W):
        cj = [xv[c][j] - mu[c] for c in range(C)]
        for c in range(C):
            for d in range(c, C):
                t = cj[c] * cj[d]
                cov[c][d] = t if cov[c][d] is None else cov[c][d] + t
    inv_wm1 = 1.0 / float(W - 1)
    for c in range(C):
        for d in range(c, C):
            cov[c][d] = cov[c][d] * inv_wm1
            cov[d][c] = cov[c][d]

    # Trace normalization + ridge:  cov/tr + tr*0.001*I
    tr = cov[0][0]
    for c in range(1, C):
        tr = tr + cov[c][c]
    inv_tr = 1.0 / tr
    covn = [[cov[c][d] * inv_tr for d in range(C)] for c in range(C)]
    ridge = tr * 0.001
    for c in range(C):
        covn[c][c] = covn[c][c] + ridge

    # Determinant of the (SPD) normalized + ridged covariance.
    if C == 1:
        det = covn[0][0]
    elif C == 2:
        det = covn[0][0] * covn[1][1] - covn[0][1] * covn[1][0]
    elif C == 3:
        det = (covn[0][0] * (covn[1][1] * covn[2][2] - covn[1][2] * covn[2][1])
               - covn[0][1] * (covn[1][0] * covn[2][2] - covn[1][2] * covn[2][0])
               + covn[0][2] * (covn[1][0] * covn[2][1] - covn[1][1] * covn[2][0]))
    else:
        # Unrolled no-pivot Gaussian elimination (matrix is SPD).
        A = [[covn[c][d] for d in range(C)] for c in range(C)]
        det = None
        for i in range(C):
            piv = A[i][i]
            det = piv if det is None else det * piv
            inv_piv = 1.0 / piv
            for r in range(i + 1, C):
                f = A[r][i] * inv_piv
                for col in range(i + 1, C):
                    A[r][col] = A[r][col] - f * A[i][col]

    power = -1.0 / float(C + k)
    dsp = jnp.exp(power * jnp.log(det))                 # det > 0 for SPD matrix

    # Extended block matrix rows (fully unrolled, tiny Ck x Ck).
    Ck = C + k
    if k == 0:
        rows = covn
    else:
        ones = jnp.ones_like(tr)
        zeros = jnp.zeros_like(tr)
        rows = []
        for c in range(C):
            rows.append([covn[c][d] + float(k) * mu[c] * mu[d]
                         for d in range(C)] + [mu[c]] * k)
        for r in range(k):
            rows.append([mu[d] for d in range(C)]
                        + [ones if r == j else zeros for j in range(k)])

    # Scale by det^power; each store is a full (ts, 128) tile -> unmasked vst.
    for i in range(Ck):
        for j in range(Ck):
            o_ref[i * Ck + j] = (dsp * rows[i][j]).astype(o_ref.dtype)


def _gaussian_embedding_impl(x, k, ts, vmem_limit_mb):
    N, C, W, T, V, M = x.shape
    B = N * T * V * M
    Ck = C + k

    # Single transpose: xk[w, c, b] = x[n, c, w, t, v, m], b = ((n*T+t)*V+v)*M + m.
    xk = jnp.transpose(x, (2, 1, 0, 3, 4, 5)).reshape(W, C, B)

    bq_min = (B + _LANE - 1) // _LANE
    ts_eff = min(_round_up(ts, 8), _round_up(bq_min, 8))
    bq = _round_up(bq_min, ts_eff)
    bp = bq * _LANE
    if bp != B:
        # Replicate edge items so padded lanes stay numerically benign
        # (results are sliced off below).
        xk = jnp.pad(xk, ((0, 0), (0, 0), (0, bp - B)), mode="edge")
    xk = xk.reshape(W, C, bq, _LANE)         # batch as (sublane-blocks, lanes)

    kern = functools.partial(_gaussian_emb_kernel, C=C, W=W, k=k)
    out = pl.pallas_call(
        kern,
        out_shape=jax.ShapeDtypeStruct((Ck * Ck, bq, _LANE), jnp.float32),
        grid_spec=pltpu.PrefetchScalarGridSpec(
            num_scalar_prefetch=0,
            grid=(bq // ts_eff,),
            in_specs=[pl.BlockSpec((W, C, ts_eff, _LANE),
                                   lambda i: (0, 0, i, 0))],
            out_specs=pl.BlockSpec((Ck * Ck, ts_eff, _LANE),
                                   lambda i: (0, i, 0)),
        ),
        compiler_params=pltpu.CompilerParams(
            dimension_semantics=("parallel",),
            vmem_limit_bytes=vmem_limit_mb * 1024 * 1024,
        ),
    )(xk)

    out = out.reshape(Ck * Ck, bp)[:, :B]                        # (Ck*Ck, B)
    return jnp.transpose(out, (1, 0)).reshape(N, T, V, M, Ck, Ck)


_gaussian_embedding_jit = jax.jit(_gaussian_embedding_impl, static_argnums=(1, 2, 3))


def gaussian_embedding(x, k, *, ts=128, vmem_limit_mb=48):
    """Pallas-TPU forward of Gaussian_Embedding(k).  x: (N, C, W, T, V, M)."""
    return _gaussian_embedding_jit(x, k, ts, vmem_limit_mb)


def _reference(x, k):
    """Pure-JAX reproduction of the PyTorch forward, for verification."""
    N, C, W, T, V, M = x.shape
    xp = jnp.transpose(x, (0, 3, 4, 5, 2, 1)).reshape(-1, C, W)
    x_mean = jnp.mean(xp, axis=2, keepdims=True)
    xc = xp - x_mean
    x_cov = jnp.matmul(xc, jnp.swapaxes(xc, -1, -2)) / (W - 1)
    tr = jnp.trace(x_cov, axis1=-2, axis2=-1)[:, None, None]
    x_cov = x_cov / tr + tr * jnp.eye(C, dtype=x.dtype) * 0.001
    x_mean = x_mean.reshape(N, T, V, M, C, 1)
    x_cov = x_cov.reshape(N, T, V, M, C, C)
    det = jnp.linalg.det(x_cov)[..., None, None]
    dsp = det ** (-1.0 / (C + k))
    if k == 0:
        return dsp * x_cov
    Ck = C + k
    mu_outer = jnp.matmul(x_mean, jnp.swapaxes(x_mean, -1, -2))
    spm = x_cov + k * mu_outer
    E = jnp.zeros((N, T, V, M, Ck, Ck), dtype=x.dtype)
    E = E.at[..., :C, :C].set(spm)
    E = E.at[..., :C, C:].set(jnp.broadcast_to(x_mean, (N, T, V, M, C, k)))
    E = E.at[..., C:, :C].set(
        jnp.broadcast_to(jnp.swapaxes(x_mean, -1, -2), (N, T, V, M, k, C)))
    E = E.at[..., C:, C:].set(jnp.eye(k, dtype=x.dtype))
    return dsp * E


if __name__ == "__main__":
    # Case 1: k = 1 (extended block matrix), default tiling.
    N, C, W, T, V, M = 2, 3, 16, 4, 8, 2
    k = 1
    x = jax.random.normal(jax.random.PRNGKey(0), (N, C, W, T, V, M),
                          dtype=jnp.float32)
    out = jax.block_until_ready(gaussian_embedding(x, k))
    assert out.shape == (N, T, V, M, C + k, C + k), out.shape
    ref = _reference(x, k)
    if not bool(jnp.allclose(out, ref, rtol=2e-3, atol=5e-4)):
        raise AssertionError(
            f"case1 mismatch, max abs err = {float(jnp.max(jnp.abs(out - ref)))}")

    # Case 2: k = 0 branch, multi-step grid (ts=8 -> 2 steps) + ragged/padded batch.
    N2, C2, W2, T2, V2, M2 = 2, 3, 8, 8, 16, 7        # B = 1792 -> padded to 2048
    k2 = 0
    x2 = jax.random.normal(jax.random.PRNGKey(0), (N2, C2, W2, T2, V2, M2),
                           dtype=jnp.float32)
    out2 = jax.block_until_ready(gaussian_embedding(x2, k2, ts=8))
    assert out2.shape == (N2, T2, V2, M2, C2, C2), out2.shape
    ref2 = _reference(x2, k2)
    if not bool(jnp.allclose(out2, ref2, rtol=2e-3, atol=5e-4)):
        raise AssertionError(
            f"case2 mismatch, max abs err = {float(jnp.max(jnp.abs(out2 - ref2)))}")

    print("KERNEL_OK")
</pallas_src>

<mosaic_0001>
module attributes {stable_mosaic.version = 11 : i64} {
  func.func @_gaussian_emb_kernel(%arg0: i32, %arg1: memref<16x3x8x128xf32, #tpu.memory_space<vmem>>, %arg2: memref<16x8x128xf32, #tpu.memory_space<vmem>>) attributes {dimension_semantics = [#tpu.dimension_semantics<parallel>], iteration_bounds = array<i64: 1>, scalar_prefetch = 0 : i64, scratch_operands = 0 : i64, tpu.core_type = #tpu.core_type<tc>, window_params = [{transform_indices = @transform_0, window_bounds = array<i64: 16, 3, 8, 128>}, {transform_indices = @transform_1, window_bounds = array<i64: 16, 8, 128>}]} {
    %c0 = arith.constant 0 : index
    %c0_0 = arith.constant 0 : index
    %c0_1 = arith.constant 0 : index
    %c0_2 = arith.constant 0 : index
    %0 = vector.load %arg1[%c0, %c0_0, %c0_1, %c0_2] : memref<16x3x8x128xf32, #tpu.memory_space<vmem>>, vector<16x3x8x128xf32>
    %1 = vector.extract_strided_slice %0 {offsets = [0, 0, 0, 0], sizes = [1, 1, 8, 128], strides = [1, 1, 1, 1]} : vector<16x3x8x128xf32> to vector<1x1x8x128xf32>
    %2 = vector.shape_cast %1 : vector<1x1x8x128xf32> to vector<8x128xf32>
    %3 = vector.extract_strided_slice %0 {offsets = [0, 1, 0, 0], sizes = [1, 1, 8, 128], strides = [1, 1, 1, 1]} : vector<16x3x8x128xf32> to vector<1x1x8x128xf32>
    %4 = vector.shape_cast %3 : vector<1x1x8x128xf32> to vector<8x128xf32>
    %5 = vector.extract_strided_slice %0 {offsets = [0, 2, 0, 0], sizes = [1, 1, 8, 128], strides = [1, 1, 1, 1]} : vector<16x3x8x128xf32> to vector<1x1x8x128xf32>
    %6 = vector.shape_cast %5 : vector<1x1x8x128xf32> to vector<8x128xf32>
    %7 = vector.extract_strided_slice %0 {offsets = [1, 0, 0, 0], sizes = [1, 1, 8, 128], strides = [1, 1, 1, 1]} : vector<16x3x8x128xf32> to vector<1x1x8x128xf32>
    %8 = vector.shape_cast %7 : vector<1x1x8x128xf32> to vector<8x128xf32>
    %9 = vector.extract_strided_slice %0 {offsets = [1, 1, 0, 0], sizes = [1, 1, 8, 128], strides = [1, 1, 1, 1]} : vector<16x3x8x128xf32> to vector<1x1x8x128xf32>
    %10 = vector.shape_cast %9 : vector<1x1x8x128xf32> to vector<8x128xf32>
    %11 = vector.extract_strided_slice %0 {offsets = [1, 2, 0, 0], sizes = [1, 1, 8, 128], strides = [1, 1, 1, 1]} : vector<16x3x8x128xf32> to vector<1x1x8x128xf32>
    %12 = vector.shape_cast %11 : vector<1x1x8x128xf32> to vector<8x128xf32>
    %13 = vector.extract_strided_slice %0 {offsets = [2, 0, 0, 0], sizes = [1, 1, 8, 128], strides = [1, 1, 1, 1]} : vector<16x3x8x128xf32> to vector<1x1x8x128xf32>
    %14 = vector.shape_cast %13 : vector<1x1x8x128xf32> to vector<8x128xf32>
    %15 = vector.extract_strided_slice %0 {offsets = [2, 1, 0, 0], sizes = [1, 1, 8, 128], strides = [1, 1, 1, 1]} : vector<16x3x8x128xf32> to vector<1x1x8x128xf32>
    %16 = vector.shape_cast %15 : vector<1x1x8x128xf32> to vector<8x128xf32>
    %17 = vector.extract_strided_slice %0 {offsets = [2, 2, 0, 0], sizes = [1, 1, 8, 128], strides = [1, 1, 1, 1]} : vector<16x3x8x128xf32> to vector<1x1x8x128xf32>
    %18 = vector.shape_cast %17 : vector<1x1x8x128xf32> to vector<8x128xf32>
    %19 = vector.extract_strided_slice %0 {offsets = [3, 0, 0, 0], sizes = [1, 1, 8, 128], strides = [1, 1, 1, 1]} : vector<16x3x8x128xf32> to vector<1x1x8x128xf32>
    %20 = vector.shape_cast %19 : vector<1x1x8x128xf32> to vector<8x128xf32>
    %21 = vector.extract_strided_slice %0 {offsets = [3, 1, 0, 0], sizes = [1, 1, 8, 128], strides = [1, 1, 1, 1]} : vector<16x3x8x128xf32> to vector<1x1x8x128xf32>
    %22 = vector.shape_cast %21 : vector<1x1x8x128xf32> to vector<8x128xf32>
    %23 = vector.extract_strided_slice %0 {offsets = [3, 2, 0, 0], sizes = [1, 1, 8, 128], strides = [1, 1, 1, 1]} : vector<16x3x8x128xf32> to vector<1x1x8x128xf32>
    %24 = vector.shape_cast %23 : vector<1x1x8x128xf32> to vector<8x128xf32>
    %25 = vector.extract_strided_slice %0 {offsets = [4, 0, 0, 0], sizes = [1, 1, 8, 128], strides = [1, 1, 1, 1]} : vector<16x3x8x128xf32> to vector<1x1x8x128xf32>
    %26 = vector.shape_cast %25 : vector<1x1x8x128xf32> to vector<8x128xf32>
    %27 = vector.extract_strided_slice %0 {offsets = [4, 1, 0, 0], sizes = [1, 1, 8, 128], strides = [1, 1, 1, 1]} : vector<16x3x8x128xf32> to vector<1x1x8x128xf32>
    %28 = vector.shape_cast %27 : vector<1x1x8x128xf32> to vector<8x128xf32>
    %29 = vector.extract_strided_slice %0 {offsets = [4, 2, 0, 0], sizes = [1, 1, 8, 128], strides = [1, 1, 1, 1]} : vector<16x3x8x128xf32> to vector<1x1x8x128xf32>
    %30 = vector.shape_cast %29 : vector<1x1x8x128xf32> to vector<8x128xf32>
    %31 = vector.extract_strided_slice %0 {offsets = [5, 0, 0, 0], sizes = [1, 1, 8, 128], strides = [1, 1, 1, 1]} : vector<16x3x8x128xf32> to vector<1x1x8x128xf32>
    %32 = vector.shape_cast %31 : vector<1x1x8x128xf32> to vector<8x128xf32>
    %33 = vector.extract_strided_slice %0 {offsets = [5, 1, 0, 0], sizes = [1, 1, 8, 128], strides = [1, 1, 1, 1]} : vector<16x3x8x128xf32> to vector<1x1x8x128xf32>
    %34 = vector.shape_cast %33 : vector<1x1x8x128xf32> to vector<8x128xf32>
    %35 = vector.extract_strided_slice %0 {offsets = [5, 2, 0, 0], sizes = [1, 1, 8, 128], strides = [1, 1, 1, 1]} : vector<16x3x8x128xf32> to vector<1x1x8x128xf32>
    %36 = vector.shape_cast %35 : vector<1x1x8x128xf32> to vector<8x128xf32>
    %37 = vector.extract_strided_slice %0 {offsets = [6, 0, 0, 0], sizes = [1, 1, 8, 128], strides = [1, 1, 1, 1]} : vector<16x3x8x128xf32> to vector<1x1x8x128xf32>
    %38 = vector.shape_cast %37 : vector<1x1x8x128xf32> to vector<8x128xf32>
    %39 = vector.extract_strided_slice %0 {offsets = [6, 1, 0, 0], sizes = [1, 1, 8, 128], strides = [1, 1, 1, 1]} : vector<16x3x8x128xf32> to vector<1x1x8x128xf32>
    %40 = vector.shape_cast %39 : vector<1x1x8x128xf32> to vector<8x128xf32>
    %41 = vector.extract_strided_slice %0 {offsets = [6, 2, 0, 0], sizes = [1, 1, 8, 128], strides = [1, 1, 1, 1]} : vector<16x3x8x128xf32> to vector<1x1x8x128xf32>
    %42 = vector.shape_cast %41 : vector<1x1x8x128xf32> to vector<8x128xf32>
    %43 = vector.extract_strided_slice %0 {offsets = [7, 0, 0, 0], sizes = [1, 1, 8, 128], strides = [1, 1, 1, 1]} : vector<16x3x8x128xf32> to vector<1x1x8x128xf32>
    %44 = vector.shape_cast %43 : vector<1x1x8x128xf32> to vector<8x128xf32>
    %45 = vector.extract_strided_slice %0 {offsets = [7, 1, 0, 0], sizes = [1, 1, 8, 128], strides = [1, 1, 1, 1]} : vector<16x3x8x128xf32> to vector<1x1x8x128xf32>
    %46 = vector.shape_cast %45 : vector<1x1x8x128xf32> to vector<8x128xf32>
    %47 = vector.extract_strided_slice %0 {offsets = [7, 2, 0, 0], sizes = [1, 1, 8, 128], strides = [1, 1, 1, 1]} : vector<16x3x8x128xf32> to vector<1x1x8x128xf32>
    %48 = vector.shape_cast %47 : vector<1x1x8x128xf32> to vector<8x128xf32>
    %49 = vector.extract_strided_slice %0 {offsets = [8, 0, 0, 0], sizes = [1, 1, 8, 128], strides = [1, 1, 1, 1]} : vector<16x3x8x128xf32> to vector<1x1x8x128xf32>
    %50 = vector.shape_cast %49 : vector<1x1x8x128xf32> to vector<8x128xf32>
    %51 = vector.extract_strided_slice %0 {offsets = [8, 1, 0, 0], sizes = [1, 1, 8, 128], strides = [1, 1, 1, 1]} : vector<16x3x8x128xf32> to vector<1x1x8x128xf32>
    %52 = vector.shape_cast %51 : vector<1x1x8x128xf32> to vector<8x128xf32>
    %53 = vector.extract_strided_slice %0 {offsets = [8, 2, 0, 0], sizes = [1, 1, 8, 128], strides = [1, 1, 1, 1]} : vector<16x3x8x128xf32> to vector<1x1x8x128xf32>
    %54 = vector.shape_cast %53 : vector<1x1x8x128xf32> to vector<8x128xf32>
    %55 = vector.extract_strided_slice %0 {offsets = [9, 0, 0, 0], sizes = [1, 1, 8, 128], strides = [1, 1, 1, 1]} : vector<16x3x8x128xf32> to vector<1x1x8x128xf32>
    %56 = vector.shape_cast %55 : vector<1x1x8x128xf32> to vector<8x128xf32>
    %57 = vector.extract_strided_slice %0 {offsets = [9, 1, 0, 0], sizes = [1, 1, 8, 128], strides = [1, 1, 1, 1]} : vector<16x3x8x128xf32> to vector<1x1x8x128xf32>
    %58 = vector.shape_cast %57 : vector<1x1x8x128xf32> to vector<8x128xf32>
    %59 = vector.extract_strided_slice %0 {offsets = [9, 2, 0, 0], sizes = [1, 1, 8, 128], strides = [1, 1, 1, 1]} : vector<16x3x8x128xf32> to vector<1x1x8x128xf32>
    %60 = vector.shape_cast %59 : vector<1x1x8x128xf32> to vector<8x128xf32>
    %61 = vector.extract_strided_slice %0 {offsets = [10, 0, 0, 0], sizes = [1, 1, 8, 128], strides = [1, 1, 1, 1]} : vector<16x3x8x128xf32> to vector<1x1x8x128xf32>
    %62 = vector.shape_cast %61 : vector<1x1x8x128xf32> to vector<8x128xf32>
    %63 = vector.extract_strided_slice %0 {offsets = [10, 1, 0, 0], sizes = [1, 1, 8, 128], strides = [1, 1, 1, 1]} : vector<16x3x8x128xf32> to vector<1x1x8x128xf32>
    %64 = vector.shape_cast %63 : vector<1x1x8x128xf32> to vector<8x128xf32>
    %65 = vector.extract_strided_slice %0 {offsets = [10, 2, 0, 0], sizes = [1, 1, 8, 128], strides = [1, 1, 1, 1]} : vector<16x3x8x128xf32> to vector<1x1x8x128xf32>
    %66 = vector.shape_cast %65 : vector<1x1x8x128xf32> to vector<8x128xf32>
    %67 = vector.extract_strided_slice %0 {offsets = [11, 0, 0, 0], sizes = [1, 1, 8, 128], strides = [1, 1, 1, 1]} : vector<16x3x8x128xf32> to vector<1x1x8x128xf32>
    %68 = vector.shape_cast %67 : vector<1x1x8x128xf32> to vector<8x128xf32>
    %69 = vector.extract_strided_slice %0 {offsets = [11, 1, 0, 0], sizes = [1, 1, 8, 128], strides = [1, 1, 1, 1]} : vector<16x3x8x128xf32> to vector<1x1x8x128xf32>
    %70 = vector.shape_cast %69 : vector<1x1x8x128xf32> to vector<8x128xf32>
    %71 = vector.extract_strided_slice %0 {offsets = [11, 2, 0, 0], sizes = [1, 1, 8, 128], strides = [1, 1, 1, 1]} : vector<16x3x8x128xf32> to vector<1x1x8x128xf32>
    %72 = vector.shape_cast %71 : vector<1x1x8x128xf32> to vector<8x128xf32>
    %73 = vector.extract_strided_slice %0 {offsets = [12, 0, 0, 0], sizes = [1, 1, 8, 128], strides = [1, 1, 1, 1]} : vector<16x3x8x128xf32> to vector<1x1x8x128xf32>
    %74 = vector.shape_cast %73 : vector<1x1x8x128xf32> to vector<8x128xf32>
    %75 = vector.extract_strided_slice %0 {offsets = [12, 1, 0, 0], sizes = [1, 1, 8, 128], strides = [1, 1, 1, 1]} : vector<16x3x8x128xf32> to vector<1x1x8x128xf32>
    %76 = vector.shape_cast %75 : vector<1x1x8x128xf32> to vector<8x128xf32>
    %77 = vector.extract_strided_slice %0 {offsets = [12, 2, 0, 0], sizes = [1, 1, 8, 128], strides = [1, 1, 1, 1]} : vector<16x3x8x128xf32> to vector<1x1x8x128xf32>
    %78 = vector.shape_cast %77 : vector<1x1x8x128xf32> to vector<8x128xf32>
    %79 = vector.extract_strided_slice %0 {offsets = [13, 0, 0, 0], sizes = [1, 1, 8, 128], strides = [1, 1, 1, 1]} : vector<16x3x8x128xf32> to vector<1x1x8x128xf32>
    %80 = vector.shape_cast %79 : vector<1x1x8x128xf32> to vector<8x128xf32>
    %81 = vector.extract_strided_slice %0 {offsets = [13, 1, 0, 0], sizes = [1, 1, 8, 128], strides = [1, 1, 1, 1]} : vector<16x3x8x128xf32> to vector<1x1x8x128xf32>
    %82 = vector.shape_cast %81 : vector<1x1x8x128xf32> to vector<8x128xf32>
    %83 = vector.extract_strided_slice %0 {offsets = [13, 2, 0, 0], sizes = [1, 1, 8, 128], strides = [1, 1, 1, 1]} : vector<16x3x8x128xf32> to vector<1x1x8x128xf32>
    %84 = vector.shape_cast %83 : vector<1x1x8x128xf32> to vector<8x128xf32>
    %85 = vector.extract_strided_slice %0 {offsets = [14, 0, 0, 0], sizes = [1, 1, 8, 128], strides = [1, 1, 1, 1]} : vector<16x3x8x128xf32> to vector<1x1x8x128xf32>
    %86 = vector.shape_cast %85 : vector<1x1x8x128xf32> to vector<8x128xf32>
    %87 = vector.extract_strided_slice %0 {offsets = [14, 1, 0, 0], sizes = [1, 1, 8, 128], strides = [1, 1, 1, 1]} : vector<16x3x8x128xf32> to vector<1x1x8x128xf32>
    %88 = vector.shape_cast %87 : vector<1x1x8x128xf32> to vector<8x128xf32>
    %89 = vector.extract_strided_slice %0 {offsets = [14, 2, 0, 0], sizes = [1, 1, 8, 128], strides = [1, 1, 1, 1]} : vector<16x3x8x128xf32> to vector<1x1x8x128xf32>
    %90 = vector.shape_cast %89 : vector<1x1x8x128xf32> to vector<8x128xf32>
    %91 = vector.extract_strided_slice %0 {offsets = [15, 0, 0, 0], sizes = [1, 1, 8, 128], strides = [1, 1, 1, 1]} : vector<16x3x8x128xf32> to vector<1x1x8x128xf32>
    %92 = vector.shape_cast %91 : vector<1x1x8x128xf32> to vector<8x128xf32>
    %93 = vector.extract_strided_slice %0 {offsets = [15, 1, 0, 0], sizes = [1, 1, 8, 128], strides = [1, 1, 1, 1]} : vector<16x3x8x128xf32> to vector<1x1x8x128xf32>
    %94 = vector.shape_cast %93 : vector<1x1x8x128xf32> to vector<8x128xf32>
    %95 = vector.extract_strided_slice %0 {offsets = [15, 2, 0, 0], sizes = [1, 1, 8, 128], strides = [1, 1, 1, 1]} : vector<16x3x8x128xf32> to vector<1x1x8x128xf32>
    %96 = vector.shape_cast %95 : vector<1x1x8x128xf32> to vector<8x128xf32>
    %97 = arith.addf %2, %4 : vector<8x128xf32>
    %98 = arith.addf %97, %6 : vector<8x128xf32>
    %99 = arith.addf %98, %8 : vector<8x128xf32>
    %100 = arith.addf %99, %10 : vector<8x128xf32>
    %101 = arith.addf %100, %12 : vector<8x128xf32>
    %102 = arith.addf %101, %14 : vector<8x128xf32>
    %103 = arith.addf %102, %16 : vector<8x128xf32>
    %104 = arith.addf %103, %18 : vector<8x128xf32>
    %105 = arith.addf %104, %20 : vector<8x128xf32>
    %106 = arith.addf %105, %22 : vector<8x128xf32>
    %107 = arith.addf %106, %24 : vector<8x128xf32>
    %108 = arith.addf %107, %26 : vector<8x128xf32>
    %109 = arith.addf %108, %28 : vector<8x128xf32>
    %110 = arith.addf %109, %30 : vector<8x128xf32>
    %111 = arith.addf %110, %32 : vector<8x128xf32>
    %cst = arith.constant 6.250000e-02 : f32
    %112 = vector.broadcast %cst : f32 to vector<8x128xf32>
    %113 = arith.mulf %111, %112 : vector<8x128xf32>
    %114 = arith.addf %34, %36 : vector<8x128xf32>
    %115 = arith.addf %114, %38 : vector<8x128xf32>
    %116 = arith.addf %115, %40 : vector<8x128xf32>
    %117 = arith.addf %116, %42 : vector<8x128xf32>
    %118 = arith.addf %117, %44 : vector<8x128xf32>
    %119 = arith.addf %118, %46 : vector<8x128xf32>
    %120 = arith.addf %119, %48 : vector<8x128xf32>
    %121 = arith.addf %120, %50 : vector<8x128xf32>
    %122 = arith.addf %121, %52 : vector<8x128xf32>
    %123 = arith.addf %122, %54 : vector<8x128xf32>
    %124 = arith.addf %123, %56 : vector<8x128xf32>
    %125 = arith.addf %124, %58 : vector<8x128xf32>
    %126 = arith.addf %125, %60 : vector<8x128xf32>
    %127 = arith.addf %126, %62 : vector<8x128xf32>
    %128 = arith.addf %127, %64 : vector<8x128xf32>
    %cst_3 = arith.constant 6.250000e-02 : f32
    %129 = vector.broadcast %cst_3 : f32 to vector<8x128xf32>
    %130 = arith.mulf %128, %129 : vector<8x128xf32>
    %131 = arith.addf %66, %68 : vector<8x128xf32>
    %132 = arith.addf %131, %70 : vector<8x128xf32>
    %133 = arith.addf %132, %72 : vector<8x128xf32>
    %134 = arith.addf %133, %74 : vector<8x128xf32>
    %135 = arith.addf %134, %76 : vector<8x128xf32>
    %136 = arith.addf %135, %78 : vector<8x128xf32>
    %137 = arith.addf %136, %80 : vector<8x128xf32>
    %138 = arith.addf %137, %82 : vector<8x128xf32>
    %139 = arith.addf %138, %84 : vector<8x128xf32>
    %140 = arith.addf %139, %86 : vector<8x128xf32>
    %141 = arith.addf %140, %88 : vector<8x128xf32>
    %142 = arith.addf %141, %90 : vector<8x128xf32>
    %143 = arith.addf %142, %92 : vector<8x128xf32>
    %144 = arith.addf %143, %94 : vector<8x128xf32>
    %145 = arith.addf %144, %96 : vector<8x128xf32>
    %cst_4 = arith.constant 6.250000e-02 : f32
    %146 = vector.broadcast %cst_4 : f32 to vector<8x128xf32>
    %147 = arith.mulf %145, %146 : vector<8x128xf32>
    %148 = arith.subf %2, %113 : vector<8x128xf32>
    %149 = arith.subf %34, %130 : vector<8x128xf32>
    %150 = arith.subf %66, %147 : vector<8x128xf32>
    %151 = arith.mulf %148, %148 : vector<8x128xf32>
    %152 = arith.mulf %148, %149 : vector<8x128xf32>
    %153 = arith.mulf %148, %150 : vector<8x128xf32>
    %154 = arith.mulf %149, %149 : vector<8x128xf32>
    %155 = arith.mulf %149, %150 : vector<8x128xf32>
    %156 = arith.mulf %150, %150 : vector<8x128xf32>
    %157 = arith.subf %4, %113 : vector<8x128xf32>
    %158 = arith.subf %36, %130 : vector<8x128xf32>
    %159 = arith.subf %68, %147 : vector<8x128xf32>
    %160 = arith.mulf %157, %157 : vector<8x128xf32>
    %161 = arith.addf %151, %160 : vector<8x128xf32>
    %162 = arith.mulf %157, %158 : vector<8x128xf32>
    %163 = arith.addf %152, %162 : vector<8x128xf32>
    %164 = arith.mulf %157, %159 : vector<8x128xf32>
    %165 = arith.addf %153, %164 : vector<8x128xf32>
    %166 = arith.mulf %158, %158 : vector<8x128xf32>
    %167 = arith.addf %154, %166 : vector<8x128xf32>
    %168 = arith.mulf %158, %159 : vector<8x128xf32>
    %169 = arith.addf %155, %168 : vector<8x128xf32>
    %170 = arith.mulf %159, %159 : vector<8x128xf32>
    %171 = arith.addf %156, %170 : vector<8x128xf32>
    %172 = arith.subf %6, %113 : vector<8x128xf32>
    %173 = arith.subf %38, %130 : vector<8x128xf32>
    %174 = arith.subf %70, %147 : vector<8x128xf32>
    %175 = arith.mulf %172, %172 : vector<8x128xf32>
    %176 = arith.addf %161, %175 : vector<8x128xf32>
    %177 = arith.mulf %172, %173 : vector<8x128xf32>
    %178 = arith.addf %163, %177 : vector<8x128xf32>
    %179 = arith.mulf %172, %174 : vector<8x128xf32>
    %180 = arith.addf %165, %179 : vector<8x128xf32>
    %181 = arith.mulf %173, %173 : vector<8x128xf32>
    %182 = arith.addf %167, %181 : vector<8x128xf32>
    %183 = arith.mulf %173, %174 : vector<8x128xf32>
    %184 = arith.addf %169, %183 : vector<8x128xf32>
    %185 = arith.mulf %174, %174 : vector<8x128xf32>
    %186 = arith.addf %171, %185 : vector<8x128xf32>
    %187 = arith.subf %8, %113 : vector<8x128xf32>
    %188 = arith.subf %40, %130 : vector<8x128xf32>
    %189 = arith.subf %72, %147 : vector<8x128xf32>
    %190 = arith.mulf %187, %187 : vector<8x128xf32>
    %191 = arith.addf %176, %190 : vector<8x128xf32>
    %192 = arith.mulf %187, %188 : vector<8x128xf32>
    %193 = arith.addf %178, %192 : vector<8x128xf32>
    %194 = arith.mulf %187, %189 : vector<8x128xf32>
    %195 = arith.addf %180, %194 : vector<8x128xf32>
    %196 = arith.mulf %188, %188 : vector<8x128xf32>
    %197 = arith.addf %182, %196 : vector<8x128xf32>
    %198 = arith.mulf %188, %189 : vector<8x128xf32>
    %199 = arith.addf %184, %198 : vector<8x128xf32>
    %200 = arith.mulf %189, %189 : vector<8x128xf32>
    %201 = arith.addf %186, %200 : vector<8x128xf32>
    %202 = arith.subf %10, %113 : vector<8x128xf32>
    %203 = arith.subf %42, %130 : vector<8x128xf32>
    %204 = arith.subf %74, %147 : vector<8x128xf32>
    %205 = arith.mulf %202, %202 : vector<8x128xf32>
    %206 = arith.addf %191, %205 : vector<8x128xf32>
    %207 = arith.mulf %202, %203 : vector<8x128xf32>
    %208 = arith.addf %193, %207 : vector<8x128xf32>
    %209 = arith.mulf %202, %204 : vector<8x128xf32>
    %210 = arith.addf %195, %209 : vector<8x128xf32>
    %211 = arith.mulf %203, %203 : vector<8x128xf32>
    %212 = arith.addf %197, %211 : vector<8x128xf32>
    %213 = arith.mulf %203, %204 : vector<8x128xf32>
    %214 = arith.addf %199, %213 : vector<8x128xf32>
    %215 = arith.mulf %204, %204 : vector<8x128xf32>
    %216 = arith.addf %201, %215 : vector<8x128xf32>
    %217 = arith.subf %12, %113 : vector<8x128xf32>
    %218 = arith.subf %44, %130 : vector<8x128xf32>
    %219 = arith.subf %76, %147 : vector<8x128xf32>
    %220 = arith.mulf %217, %217 : vector<8x128xf32>
    %221 = arith.addf %206, %220 : vector<8x128xf32>
    %222 = arith.mulf %217, %218 : vector<8x128xf32>
    %223 = arith.addf %208, %222 : vector<8x128xf32>
    %224 = arith.mulf %217, %219 : vector<8x128xf32>
    %225 = arith.addf %210, %224 : vector<8x128xf32>
    %226 = arith.mulf %218, %218 : vector<8x128xf32>
    %227 = arith.addf %212, %226 : vector<8x128xf32>
    %228 = arith.mulf %218, %219 : vector<8x128xf32>
    %229 = arith.addf %214, %228 : vector<8x128xf32>
    %230 = arith.mulf %219, %219 : vector<8x128xf32>
    %231 = arith.addf %216, %230 : vector<8x128xf32>
    %232 = arith.subf %14, %113 : vector<8x128xf32>
    %233 = arith.subf %46, %130 : vector<8x128xf32>
    %234 = arith.subf %78, %147 : vector<8x128xf32>
    %235 = arith.mulf %232, %232 : vector<8x128xf32>
    %236 = arith.addf %221, %235 : vector<8x128xf32>
    %237 = arith.mulf %232, %233 : vector<8x128xf32>
    %238 = arith.addf %223, %237 : vector<8x128xf32>
    %239 = arith.mulf %232, %234 : vector<8x128xf32>
    %240 = arith.addf %225, %239 : vector<8x128xf32>
    %241 = arith.mulf %233, %233 : vector<8x128xf32>
    %242 = arith.addf %227, %241 : vector<8x128xf32>
    %243 = arith.mulf %233, %234 : vector<8x128xf32>
    %244 = arith.addf %229, %243 : vector<8x128xf32>
    %245 = arith.mulf %234, %234 : vector<8x128xf32>
    %246 = arith.addf %231, %245 : vector<8x128xf32>
    %247 = arith.subf %16, %113 : vector<8x128xf32>
    %248 = arith.subf %48, %130 : vector<8x128xf32>
    %249 = arith.subf %80, %147 : vector<8x128xf32>
    %250 = arith.mulf %247, %247 : vector<8x128xf32>
    %251 = arith.addf %236, %250 : vector<8x128xf32>
    %252 = arith.mulf %247, %248 : vector<8x128xf32>
    %253 = arith.addf %238, %252 : vector<8x128xf32>
    %254 = arith.mulf %247, %249 : vector<8x128xf32>
    %255 = arith.addf %240, %254 : vector<8x128xf32>
    %256 = arith.mulf %248, %248 : vector<8x128xf32>
    %257 = arith.addf %242, %256 : vector<8x128xf32>
    %258 = arith.mulf %248, %249 : vector<8x128xf32>
    %259 = arith.addf %244, %258 : vector<8x128xf32>
    %260 = arith.mulf %249, %249 : vector<8x128xf32>
    %261 = arith.addf %246, %260 : vector<8x128xf32>
    %262 = arith.subf %18, %113 : vector<8x128xf32>
    %263 = arith.subf %50, %130 : vector<8x128xf32>
    %264 = arith.subf %82, %147 : vector<8x128xf32>
    %265 = arith.mulf %262, %262 : vector<8x128xf32>
    %266 = arith.addf %251, %265 : vector<8x128xf32>
    %267 = arith.mulf %262, %263 : vector<8x128xf32>
    %268 = arith.addf %253, %267 : vector<8x128xf32>
    %269 = arith.mulf %262, %264 : vector<8x128xf32>
    %270 = arith.addf %255, %269 : vector<8x128xf32>
    %271 = arith.mulf %263, %263 : vector<8x128xf32>
    %272 = arith.addf %257, %271 : vector<8x128xf32>
    %273 = arith.mulf %263, %264 : vector<8x128xf32>
    %274 = arith.addf %259, %273 : vector<8x128xf32>
    %275 = arith.mulf %264, %264 : vector<8x128xf32>
    %276 = arith.addf %261, %275 : vector<8x128xf32>
    %277 = arith.subf %20, %113 : vector<8x128xf32>
    %278 = arith.subf %52, %130 : vector<8x128xf32>
    %279 = arith.subf %84, %147 : vector<8x128xf32>
    %280 = arith.mulf %277, %277 : vector<8x128xf32>
    %281 = arith.addf %266, %280 : vector<8x128xf32>
    %282 = arith.mulf %277, %278 : vector<8x128xf32>
    %283 = arith.addf %268, %282 : vector<8x128xf32>
    %284 = arith.mulf %277, %279 : vector<8x128xf32>
    %285 = arith.addf %270, %284 : vector<8x128xf32>
    %286 = arith.mulf %278, %278 : vector<8x128xf32>
    %287 = arith.addf %272, %286 : vector<8x128xf32>
    %288 = arith.mulf %278, %279 : vector<8x128xf32>
    %289 = arith.addf %274, %288 : vector<8x128xf32>
    %290 = arith.mulf %279, %279 : vector<8x128xf32>
    %291 = arith.addf %276, %290 : vector<8x128xf32>
    %292 = arith.subf %22, %113 : vector<8x128xf32>
    %293 = arith.subf %54, %130 : vector<8x128xf32>
    %294 = arith.subf %86, %147 : vector<8x128xf32>
    %295 = arith.mulf %292, %292 : vector<8x128xf32>
    %296 = arith.addf %281, %295 : vector<8x128xf32>
    %297 = arith.mulf %292, %293 : vector<8x128xf32>
    %298 = arith.addf %283, %297 : vector<8x128xf32>
    %299 = arith.mulf %292, %294 : vector<8x128xf32>
    %300 = arith.addf %285, %299 : vector<8x128xf32>
    %301 = arith.mulf %293, %293 : vector<8x128xf32>
    %302 = arith.addf %287, %301 : vector<8x128xf32>
    %303 = arith.mulf %293, %294 : vector<8x128xf32>
    %304 = arith.addf %289, %303 : vector<8x128xf32>
    %305 = arith.mulf %294, %294 : vector<8x128xf32>
    %306 = arith.addf %291, %305 : vector<8x128xf32>
    %307 = arith.subf %24, %113 : vector<8x128xf32>
    %308 = arith.subf %56, %130 : vector<8x128xf32>
    %309 = arith.subf %88, %147 : vector<8x128xf32>
    %310 = arith.mulf %307, %307 : vector<8x128xf32>
    %311 = arith.addf %296, %310 : vector<8x128xf32>
    %312 = arith.mulf %307, %308 : vector<8x128xf32>
    %313 = arith.addf %298, %312 : vector<8x128xf32>
    %314 = arith.mulf %307, %309 : vector<8x128xf32>
    %315 = arith.addf %300, %314 : vector<8x128xf32>
    %316 = arith.mulf %308, %308 : vector<8x128xf32>
    %317 = arith.addf %302, %316 : vector<8x128xf32>
    %318 = arith.mulf %308, %309 : vector<8x128xf32>
    %319 = arith.addf %304, %318 : vector<8x128xf32>
    %320 = arith.mulf %309, %309 : vector<8x128xf32>
    %321 = arith.addf %306, %320 : vector<8x128xf32>
    %322 = arith.subf %26, %113 : vector<8x128xf32>
    %323 = arith.subf %58, %130 : vector<8x128xf32>
    %324 = arith.subf %90, %147 : vector<8x128xf32>
    %325 = arith.mulf %322, %322 : vector<8x128xf32>
    %326 = arith.addf %311, %325 : vector<8x128xf32>
    %327 = arith.mulf %322, %323 : vector<8x128xf32>
    %328 = arith.addf %313, %327 : vector<8x128xf32>
    %329 = arith.mulf %322, %324 : vector<8x128xf32>
    %330 = arith.addf %315, %329 : vector<8x128xf32>
    %331 = arith.mulf %323, %323 : vector<8x128xf32>
    %332 = arith.addf %317, %331 : vector<8x128xf32>
    %333 = arith.mulf %323, %324 : vector<8x128xf32>
    %334 = arith.addf %319, %333 : vector<8x128xf32>
    %335 = arith.mulf %324, %324 : vector<8x128xf32>
    %336 = arith.addf %321, %335 : vector<8x128xf32>
    %337 = arith.subf %28, %113 : vector<8x128xf32>
    %338 = arith.subf %60, %130 : vector<8x128xf32>
    %339 = arith.subf %92, %147 : vector<8x128xf32>
    %340 = arith.mulf %337, %337 : vector<8x128xf32>
    %341 = arith.addf %326, %340 : vector<8x128xf32>
    %342 = arith.mulf %337, %338 : vector<8x128xf32>
    %343 = arith.addf %328, %342 : vector<8x128xf32>
    %344 = arith.mulf %337, %339 : vector<8x128xf32>
    %345 = arith.addf %330, %344 : vector<8x128xf32>
    %346 = arith.mulf %338, %338 : vector<8x128xf32>
    %347 = arith.addf %332, %346 : vector<8x128xf32>
    %348 = arith.mulf %338, %339 : vector<8x128xf32>
    %349 = arith.addf %334, %348 : vector<8x128xf32>
    %350 = arith.mulf %339, %339 : vector<8x128xf32>
    %351 = arith.addf %336, %350 : vector<8x128xf32>
    %352 = arith.subf %30, %113 : vector<8x128xf32>
    %353 = arith.subf %62, %130 : vector<8x128xf32>
    %354 = arith.subf %94, %147 : vector<8x128xf32>
    %355 = arith.mulf %352, %352 : vector<8x128xf32>
    %356 = arith.addf %341, %355 : vector<8x128xf32>
    %357 = arith.mulf %352, %353 : vector<8x128xf32>
    %358 = arith.addf %343, %357 : vector<8x128xf32>
    %359 = arith.mulf %352, %354 : vector<8x128xf32>
    %360 = arith.addf %345, %359 : vector<8x128xf32>
    %361 = arith.mulf %353, %353 : vector<8x128xf32>
    %362 = arith.addf %347, %361 : vector<8x128xf32>
    %363 = arith.mulf %353, %354 : vector<8x128xf32>
    %364 = arith.addf %349, %363 : vector<8x128xf32>
    %365 = arith.mulf %354, %354 : vector<8x128xf32>
    %366 = arith.addf %351, %365 : vector<8x128xf32>
    %367 = arith.subf %32, %113 : vector<8x128xf32>
    %368 = arith.subf %64, %130 : vector<8x128xf32>
    %369 = arith.subf %96, %147 : vector<8x128xf32>
    %370 = arith.mulf %367, %367 : vector<8x128xf32>
    %371 = arith.addf %356, %370 : vector<8x128xf32>
    %372 = arith.mulf %367, %368 : vector<8x128xf32>
    %373 = arith.addf %358, %372 : vector<8x128xf32>
    %374 = arith.mulf %367, %369 : vector<8x128xf32>
    %375 = arith.addf %360, %374 : vector<8x128xf32>
    %376 = arith.mulf %368, %368 : vector<8x128xf32>
    %377 = arith.addf %362, %376 : vector<8x128xf32>
    %378 = arith.mulf %368, %369 : vector<8x128xf32>
    %379 = arith.addf %364, %378 : vector<8x128xf32>
    %380 = arith.mulf %369, %369 : vector<8x128xf32>
    %381 = arith.addf %366, %380 : vector<8x128xf32>
    %cst_5 = arith.constant 0.0666666701 : f32
    %382 = vector.broadcast %cst_5 : f32 to vector<8x128xf32>
    %383 = arith.mulf %371, %382 : vector<8x128xf32>
    %cst_6 = arith.constant 0.0666666701 : f32
    %384 = vector.broadcast %cst_6 : f32 to vector<8x128xf32>
    %385 = arith.mulf %373, %384 : vector<8x128xf32>
    %cst_7 = arith.constant 0.0666666701 : f32
    %386 = vector.broadcast %cst_7 : f32 to vector<8x128xf32>
    %387 = arith.mulf %375, %386 : vector<8x128xf32>
    %cst_8 = arith.constant 0.0666666701 : f32
    %388 = vector.broadcast %cst_8 : f32 to vector<8x128xf32>
    %389 = arith.mulf %377, %388 : vector<8x128xf32>
    %cst_9 = arith.constant 0.0666666701 : f32
    %390 = vector.broadcast %cst_9 : f32 to vector<8x128xf32>
    %391 = arith.mulf %379, %390 : vector<8x128xf32>
    %cst_10 = arith.constant 0.0666666701 : f32
    %392 = vector.broadcast %cst_10 : f32 to vector<8x128xf32>
    %393 = arith.mulf %381, %392 : vector<8x128xf32>
    %394 = arith.addf %383, %389 : vector<8x128xf32>
    %395 = arith.addf %394, %393 : vector<8x128xf32>
    %cst_11 = arith.constant 1.000000e+00 : f32
    %396 = vector.broadcast %cst_11 : f32 to vector<8x128xf32>
    %397 = arith.divf %396, %395 : vector<8x128xf32>
    %398 = arith.mulf %383, %397 : vector<8x128xf32>
    %399 = arith.mulf %385, %397 : vector<8x128xf32>
    %400 = arith.mulf %387, %397 : vector<8x128xf32>
    %401 = arith.mulf %385, %397 : vector<8x128xf32>
    %402 = arith.mulf %389, %397 : vector<8x128xf32>
    %403 = arith.mulf %391, %397 : vector<8x128xf32>
    %404 = arith.mulf %387, %397 : vector<8x128xf32>
    %405 = arith.mulf %391, %397 : vector<8x128xf32>
    %406 = arith.mulf %393, %397 : vector<8x128xf32>
    %cst_12 = arith.constant 1.000000e-03 : f32
    %407 = vector.broadcast %cst_12 : f32 to vector<8x128xf32>
    %408 = arith.mulf %395, %407 : vector<8x128xf32>
    %409 = arith.addf %398, %408 : vector<8x128xf32>
    %410 = arith.addf %402, %408 : vector<8x128xf32>
    %411 = arith.addf %406, %408 : vector<8x128xf32>
    %412 = arith.mulf %410, %411 : vector<8x128xf32>
    %413 = arith.mulf %403, %405 : vector<8x128xf32>
    %414 = arith.subf %412, %413 : vector<8x128xf32>
    %415 = arith.mulf %409, %414 : vector<8x128xf32>
    %416 = arith.mulf %401, %411 : vector<8x128xf32>
    %417 = arith.mulf %403, %404 : vector<8x128xf32>
    %418 = arith.subf %416, %417 : vector<8x128xf32>
    %419 = arith.mulf %399, %418 : vector<8x128xf32>
    %420 = arith.subf %415, %419 : vector<8x128xf32>
    %421 = arith.mulf %401, %405 : vector<8x128xf32>
    %422 = arith.mulf %410, %404 : vector<8x128xf32>
    %423 = arith.subf %421, %422 : vector<8x128xf32>
    %424 = arith.mulf %400, %423 : vector<8x128xf32>
    %425 = arith.addf %420, %424 : vector<8x128xf32>
    %426 = math.log %425 : vector<8x128xf32>
    %cst_13 = arith.constant -2.500000e-01 : f32
    %427 = vector.broadcast %cst_13 : f32 to vector<8x128xf32>
    %428 = arith.mulf %427, %426 : vector<8x128xf32>
    %429 = math.exp %428 : vector<8x128xf32>
    %cst_14 = arith.constant 1.000000e+00 : f32
    %430 = vector.broadcast %cst_14 : f32 to vector<8x128xf32>
    %cst_15 = arith.constant 1.000000e+00 : f32
    %431 = vector.broadcast %cst_15 : f32 to vector<8x128xf32>
    %432 = arith.mulf %431, %113 : vector<8x128xf32>
    %433 = arith.mulf %432, %113 : vector<8x128xf32>
    %434 = arith.addf %409, %433 : vector<8x128xf32>
    %cst_16 = arith.constant 1.000000e+00 : f32
    %435 = vector.broadcast %cst_16 : f32 to vector<8x128xf32>
    %436 = arith.mulf %435, %113 : vector<8x128xf32>
    %437 = arith.mulf %436, %130 : vector<8x128xf32>
    %438 = arith.addf %399, %437 : vector<8x128xf32>
    %cst_17 = arith.constant 1.000000e+00 : f32
    %439 = vector.broadcast %cst_17 : f32 to vector<8x128xf32>
    %440 = arith.mulf %439, %113 : vector<8x128xf32>
    %441 = arith.mulf %440, %147 : vector<8x128xf32>
    %442 = arith.addf %400, %441 : vector<8x128xf32>
    %cst_18 = arith.constant 1.000000e+00 : f32
    %443 = vector.broadcast %cst_18 : f32 to vector<8x128xf32>
    %444 = arith.mulf %443, %130 : vector<8x128xf32>
    %445 = arith.mulf %444, %113 : vector<8x128xf32>
    %446 = arith.addf %401, %445 : vector<8x128xf32>
    %cst_19 = arith.constant 1.000000e+00 : f32
    %447 = vector.broadcast %cst_19 : f32 to vector<8x128xf32>
    %448 = arith.mulf %447, %130 : vector<8x128xf32>
    %449 = arith.mulf %448, %130 : vector<8x128xf32>
    %450 = arith.addf %410, %449 : vector<8x128xf32>
    %cst_20 = arith.constant 1.000000e+00 : f32
    %451 = vector.broadcast %cst_20 : f32 to vector<8x128xf32>
    %452 = arith.mulf %451, %130 : vector<8x128xf32>
    %453 = arith.mulf %452, %147 : vector<8x128xf32>
    %454 = arith.addf %403, %453 : vector<8x128xf32>
    %cst_21 = arith.constant 1.000000e+00 : f32
    %455 = vector.broadcast %cst_21 : f32 to vector<8x128xf32>
    %456 = arith.mulf %455, %147 : vector<8x128xf32>
    %457 = arith.mulf %456, %113 : vector<8x128xf32>
    %458 = arith.addf %404, %457 : vector<8x128xf32>
    %cst_22 = arith.constant 1.000000e+00 : f32
    %459 = vector.broadcast %cst_22 : f32 to vector<8x128xf32>
    %460 = arith.mulf %459, %147 : vector<8x128xf32>
    %461 = arith.mulf %460, %130 : vector<8x128xf32>
    %462 = arith.addf %405, %461 : vector<8x128xf32>
    %cst_23 = arith.constant 1.000000e+00 : f32
    %463 = vector.broadcast %cst_23 : f32 to vector<8x128xf32>
    %464 = arith.mulf %463, %147 : vector<8x128xf32>
    %465 = arith.mulf %464, %147 : vector<8x128xf32>
    %466 = arith.addf %411, %465 : vector<8x128xf32>
    %467 = arith.mulf %429, %434 : vector<8x128xf32>
    %c0_24 = arith.constant 0 : index
    %c0_25 = arith.constant 0 : index
    %c0_26 = arith.constant 0 : index
    %468 = vector.load %arg2[%c0_24, %c0_25, %c0_26] : memref<16x8x128xf32, #tpu.memory_space<vmem>>, vector<1x8x128xf32>
    %469 = vector.shape_cast %468 : vector<1x8x128xf32> to vector<8x128xf32>
    %470 = vector.shape_cast %467 : vector<8x128xf32> to vector<1x8x128xf32>
    tpu.vector_store %arg2[%c0_24, %c0_25, %c0_26], %470 {strides = array<i32>} : memref<16x8x128xf32, #tpu.memory_space<vmem>>, vector<1x8x128xf32>,
    %471 = arith.mulf %429, %438 : vector<8x128xf32>
    %c1 = arith.constant 1 : index
    %c0_27 = arith.constant 0 : index
    %c0_28 = arith.constant 0 : index
    %472 = vector.load %arg2[%c1, %c0_27, %c0_28] : memref<16x8x128xf32, #tpu.memory_space<vmem>>, vector<1x8x128xf32>
    %473 = vector.shape_cast %472 : vector<1x8x128xf32> to vector<8x128xf32>
    %474 = vector.shape_cast %471 : vector<8x128xf32> to vector<1x8x128xf32>
    tpu.vector_store %arg2[%c1, %c0_27, %c0_28], %474 {strides = array<i32>} : memref<16x8x128xf32, #tpu.memory_space<vmem>>, vector<1x8x128xf32>,
    %475 = arith.mulf %429, %442 : vector<8x128xf32>
    %c2 = arith.constant 2 : index
    %c0_29 = arith.constant 0 : index
    %c0_30 = arith.constant 0 : index
    %476 = vector.load %arg2[%c2, %c0_29, %c0_30] : memref<16x8x128xf32, #tpu.memory_space<vmem>>, vector<1x8x128xf32>
    %477 = vector.shape_cast %476 : vector<1x8x128xf32> to vector<8x128xf32>
    %478 = vector.shape_cast %475 : vector<8x128xf32> to vector<1x8x128xf32>
    tpu.vector_store %arg2[%c2, %c0_29, %c0_30], %478 {strides = array<i32>} : memref<16x8x128xf32, #tpu.memory_space<vmem>>, vector<1x8x128xf32>,
    %479 = arith.mulf %429, %113 : vector<8x128xf32>
    %c3 = arith.constant 3 : index
    %c0_31 = arith.constant 0 : index
    %c0_32 = arith.constant 0 : index
    %480 = vector.load %arg2[%c3, %c0_31, %c0_32] : memref<16x8x128xf32, #tpu.memory_space<vmem>>, vector<1x8x128xf32>
    %481 = vector.shape_cast %480 : vector<1x8x128xf32> to vector<8x128xf32>
    %482 = vector.shape_cast %479 : vector<8x128xf32> to vector<1x8x128xf32>
    tpu.vector_store %arg2[%c3, %c0_31, %c0_32], %482 {strides = array<i32>} : memref<16x8x128xf32, #tpu.memory_space<vmem>>, vector<1x8x128xf32>,
    %483 = arith.mulf %429, %446 : vector<8x128xf32>
    %c4 = arith.constant 4 : index
    %c0_33 = arith.constant 0 : index
    %c0_34 = arith.constant 0 : index
    %484 = vector.load %arg2[%c4, %c0_33, %c0_34] : memref<16x8x128xf32, #tpu.memory_space<vmem>>, vector<1x8x128xf32>
    %485 = vector.shape_cast %484 : vector<1x8x128xf32> to vector<8x128xf32>
    %486 = vector.shape_cast %483 : vector<8x128xf32> to vector<1x8x128xf32>
    tpu.vector_store %arg2[%c4, %c0_33, %c0_34], %486 {strides = array<i32>} : memref<16x8x128xf32, #tpu.memory_space<vmem>>, vector<1x8x128xf32>,
    %487 = arith.mulf %429, %450 : vector<8x128xf32>
    %c5 = arith.constant 5 : index
    %c0_35 = arith.constant 0 : index
    %c0_36 = arith.constant 0 : index
    %488 = vector.load %arg2[%c5, %c0_35, %c0_36] : memref<16x8x128xf32, #tpu.memory_space<vmem>>, vector<1x8x128xf32>
    %489 = vector.shape_cast %488 : vector<1x8x128xf32> to vector<8x128xf32>
    %490 = vector.shape_cast %487 : vector<8x128xf32> to vector<1x8x128xf32>
    tpu.vector_store %arg2[%c5, %c0_35, %c0_36], %490 {strides = array<i32>} : memref<16x8x128xf32, #tpu.memory_space<vmem>>, vector<1x8x128xf32>,
    %491 = arith.mulf %429, %454 : vector<8x128xf32>
    %c6 = arith.constant 6 : index
    %c0_37 = arith.constant 0 : index
    %c0_38 = arith.constant 0 : index
    %492 = vector.load %arg2[%c6, %c0_37, %c0_38] : memref<16x8x128xf32, #tpu.memory_space<vmem>>, vector<1x8x128xf32>
    %493 = vector.shape_cast %492 : vector<1x8x128xf32> to vector<8x128xf32>
    %494 = vector.shape_cast %491 : vector<8x128xf32> to vector<1x8x128xf32>
    tpu.vector_store %arg2[%c6, %c0_37, %c0_38], %494 {strides = array<i32>} : memref<16x8x128xf32, #tpu.memory_space<vmem>>, vector<1x8x128xf32>,
    %495 = arith.mulf %429, %130 : vector<8x128xf32>
    %c7 = arith.constant 7 : index
    %c0_39 = arith.constant 0 : index
    %c0_40 = arith.constant 0 : index
    %496 = vector.load %arg2[%c7, %c0_39, %c0_40] : memref<16x8x128xf32, #tpu.memory_space<vmem>>, vector<1x8x128xf32>
    %497 = vector.shape_cast %496 : vector<1x8x128xf32> to vector<8x128xf32>
    %498 = vector.shape_cast %495 : vector<8x128xf32> to vector<1x8x128xf32>
    tpu.vector_store %arg2[%c7, %c0_39, %c0_40], %498 {strides = array<i32>} : memref<16x8x128xf32, #tpu.memory_space<vmem>>, vector<1x8x128xf32>,
    %499 = arith.mulf %429, %458 : vector<8x128xf32>
    %c8 = arith.constant 8 : index
    %c0_41 = arith.constant 0 : index
    %c0_42 = arith.constant 0 : index
    %500 = vector.load %arg2[%c8, %c0_41, %c0_42] : memref<16x8x128xf32, #tpu.memory_space<vmem>>, vector<1x8x128xf32>
    %501 = vector.shape_cast %500 : vector<1x8x128xf32> to vector<8x128xf32>
    %502 = vector.shape_cast %499 : vector<8x128xf32> to vector<1x8x128xf32>
    tpu.vector_store %arg2[%c8, %c0_41, %c0_42], %502 {strides = array<i32>} : memref<16x8x128xf32, #tpu.memory_space<vmem>>, vector<1x8x128xf32>,
    %503 = arith.mulf %429, %462 : vector<8x128xf32>
    %c9 = arith.constant 9 : index
    %c0_43 = arith.constant 0 : index
    %c0_44 = arith.constant 0 : index
    %504 = vector.load %arg2[%c9, %c0_43, %c0_44] : memref<16x8x128xf32, #tpu.memory_space<vmem>>, vector<1x8x128xf32>
    %505 = vector.shape_cast %504 : vector<1x8x128xf32> to vector<8x128xf32>
    %506 = vector.shape_cast %503 : vector<8x128xf32> to vector<1x8x128xf32>
    tpu.vector_store %arg2[%c9, %c0_43, %c0_44], %506 {strides = array<i32>} : memref<16x8x128xf32, #tpu.memory_space<vmem>>, vector<1x8x128xf32>,
    %507 = arith.mulf %429, %466 : vector<8x128xf32>
    %c10 = arith.constant 10 : index
    %c0_45 = arith.constant 0 : index
    %c0_46 = arith.constant 0 : index
    %508 = vector.load %arg2[%c10, %c0_45, %c0_46] : memref<16x8x128xf32, #tpu.memory_space<vmem>>, vector<1x8x128xf32>
    %509 = vector.shape_cast %508 : vector<1x8x128xf32> to vector<8x128xf32>
    %510 = vector.shape_cast %507 : vector<8x128xf32> to vector<1x8x128xf32>
    tpu.vector_store %arg2[%c10, %c0_45, %c0_46], %510 {strides = array<i32>} : memref<16x8x128xf32, #tpu.memory_space<vmem>>, vector<1x8x128xf32>,
    %511 = arith.mulf %429, %147 : vector<8x128xf32>
    %c11 = arith.constant 11 : index
    %c0_47 = arith.constant 0 : index
    %c0_48 = arith.constant 0 : index
    %512 = vector.load %arg2[%c11, %c0_47, %c0_48] : memref<16x8x128xf32, #tpu.memory_space<vmem>>, vector<1x8x128xf32>
    %513 = vector.shape_cast %512 : vector<1x8x128xf32> to vector<8x128xf32>
    %514 = vector.shape_cast %511 : vector<8x128xf32> to vector<1x8x128xf32>
    tpu.vector_store %arg2[%c11, %c0_47, %c0_48], %514 {strides = array<i32>} : memref<16x8x128xf32, #tpu.memory_space<vmem>>, vector<1x8x128xf32>,
    %515 = arith.mulf %429, %113 : vector<8x128xf32>
    %c12 = arith.constant 12 : index
    %c0_49 = arith.constant 0 : index
    %c0_50 = arith.constant 0 : index
    %516 = vector.load %arg2[%c12, %c0_49, %c0_50] : memref<16x8x128xf32, #tpu.memory_space<vmem>>, vector<1x8x128xf32>
    %517 = vector.shape_cast %516 : vector<1x8x128xf32> to vector<8x128xf32>
    %518 = vector.shape_cast %515 : vector<8x128xf32> to vector<1x8x128xf32>
    tpu.vector_store %arg2[%c12, %c0_49, %c0_50], %518 {strides = array<i32>} : memref<16x8x128xf32, #tpu.memory_space<vmem>>, vector<1x8x128xf32>,
    %519 = arith.mulf %429, %130 : vector<8x128xf32>
    %c13 = arith.constant 13 : index
    %c0_51 = arith.constant 0 : index
    %c0_52 = arith.constant 0 : index
    %520 = vector.load %arg2[%c13, %c0_51, %c0_52] : memref<16x8x128xf32, #tpu.memory_space<vmem>>, vector<1x8x128xf32>
    %521 = vector.shape_cast %520 : vector<1x8x128xf32> to vector<8x128xf32>
    %522 = vector.shape_cast %519 : vector<8x128xf32> to vector<1x8x128xf32>
    tpu.vector_store %arg2[%c13, %c0_51, %c0_52], %522 {strides = array<i32>} : memref<16x8x128xf32, #tpu.memory_space<vmem>>, vector<1x8x128xf32>,
    %523 = arith.mulf %429, %147 : vector<8x128xf32>
    %c14 = arith.constant 14 : index
    %c0_53 = arith.constant 0 : index
    %c0_54 = arith.constant 0 : index
    %524 = vector.load %arg2[%c14, %c0_53, %c0_54] : memref<16x8x128xf32, #tpu.memory_space<vmem>>, vector<1x8x128xf32>
    %525 = vector.shape_cast %524 : vector<1x8x128xf32> to vector<8x128xf32>
    %526 = vector.shape_cast %523 : vector<8x128xf32> to vector<1x8x128xf32>
    tpu.vector_store %arg2[%c14, %c0_53, %c0_54], %526 {strides = array<i32>} : memref<16x8x128xf32, #tpu.memory_space<vmem>>, vector<1x8x128xf32>,
    %527 = arith.mulf %429, %430 : vector<8x128xf32>
    %c15 = arith.constant 15 : index
    %c0_55 = arith.constant 0 : index
    %c0_56 = arith.constant 0 : index
    %528 = vector.load %arg2[%c15, %c0_55, %c0_56] : memref<16x8x128xf32, #tpu.memory_space<vmem>>, vector<1x8x128xf32>
    %529 = vector.shape_cast %528 : vector<1x8x128xf32> to vector<8x128xf32>
    %530 = vector.shape_cast %527 : vector<8x128xf32> to vector<1x8x128xf32>
    tpu.vector_store %arg2[%c15, %c0_55, %c0_56], %530 {strides = array<i32>} : memref<16x8x128xf32, #tpu.memory_space<vmem>>, vector<1x8x128xf32>,
    return
  }
  func.func @transform_0(%arg0: i32) -> (i32, i32, i32, i32) {
    %c0_i32 = arith.constant 0 : i32
    %c0_i32_0 = arith.constant 0 : i32
    %c0_i32_1 = arith.constant 0 : i32
    %c0_i32_2 = arith.constant 0 : i32
    return %c0_i32, %c0_i32_0, %arg0, %c0_i32_1 : i32, i32, i32, i32
  }
  func.func @transform_1(%arg0: i32) -> (i32, i32, i32) {
    %c0_i32 = arith.constant 0 : i32
    %c0_i32_0 = arith.constant 0 : i32
    %c0_i32_1 = arith.constant 0 : i32
    return %c0_i32, %arg0, %c0_i32_0 : i32, i32, i32
  }
}

</mosaic_0001>

<bundles_post_ra>
// kernel: _gaussian_embedding_impl.1
= control target key start
LH: loop header
LB: loop body
LE: loop exit
PB: predicated region body
PF: predicated region fallthrough
CT: control target
= control target key end

     0   :  { %s941_s0 = inlined_call_operand.vmem [shape: f32[16,3,8,128], index: 0, kind: input, shape index: {}]   ;;  %s942_s1 = inlined_call_operand.vmem [shape: f32[16,8,128], index: 1, kind: output, shape index: {}]  }
   0x1   :  { %v467_v0 = vld [vmem:[%s941_s0] sm:$0xff]  ;;  %v472_v1 = vld [vmem:[%s941_s0 + $0x8] sm:$0xff]  ;;  %v477_v2 = vld [vmem:[%s941_s0 + $0x10] sm:$0xff] }
   0x2   :  { %v56_v3 = vadd.f32 %v472_v1, %v467_v0  ;;  %v484_v4 = vld [vmem:[%s941_s0 + $0x18] sm:$0xff]  ;;  %v490_v6 = vld [vmem:[%s941_s0 + $0x20] sm:$0xff]  ;;  %v500_v8 = vld [vmem:[%s941_s0 + $0x88] sm:$0xff] }
   0x3   :  { %v495_v7 = vld [vmem:[%s941_s0 + $0x80] sm:$0xff]  ;;  %v506_v10 = vld [vmem:[%s941_s0 + $0x28] sm:$0xff]  ;;  %v511_v11 = vld [vmem:[%s941_s0 + $0x90] sm:$0xff] }
   0x4   :  { %v57_v5 = vadd.f32 %v56_v3, %v477_v2  ;;  %v72_v12 = vadd.f32 %v500_v8, %v495_v7  ;;  %v518_v13 = vld [vmem:[%s941_s0 + $0x98] sm:$0xff]  ;;  %v524_v15 = vld [vmem:[%s941_s0 + $0x30] sm:$0xff]  ;;  %v530_v17 = vld [vmem:[%s941_s0 + $0xa0] sm:$0xff] }
   0x5   :  { %v536_v19 = vld [vmem:[%s941_s0 + $0x38] sm:$0xff]  ;;  %v541_v20 = vld [vmem:[%s941_s0 + $0x100] sm:$0xff]  ;;  %v547_v22 = vld [vmem:[%s941_s0 + $0xa8] sm:$0xff] }
   0x6   :  { %v58_v9 = vadd.f32 %v57_v5, %v484_v4  ;;  %v73_v16 = vadd.f32 %v72_v12, %v511_v11  ;;  %v552_v23 = vld [vmem:[%s941_s0 + $0x108] sm:$0xff]  ;;  %v557_v24 = vld [vmem:[%s941_s0 + $0x110] sm:$0xff]  ;;  %v563_v26 = vld [vmem:[%s941_s0 + $0x40] sm:$0xff] }
   0x7   :  { %v88_v28 = vadd.f32 %v552_v23, %v541_v20  ;;  %v571_v29 = vld [vmem:[%s941_s0 + $0xb0] sm:$0xff]  ;;  %v576_v30 = vld [vmem:[%s941_s0 + $0x118] sm:$0xff]  ;;  %v582_v32 = vld [vmem:[%s941_s0 + $0x48] sm:$0xff] }
   0x8   :  { %v59_v14 = vadd.f32 %v58_v9, %v490_v6  ;;  %v74_v21 = vadd.f32 %v73_v16, %v518_v13  ;;  %v589_v35 = vld [vmem:[%s941_s0 + $0xb8] sm:$0xff]  ;;  %v594_v36 = vld [vmem:[%s941_s0 + $0x120] sm:$0xff]  ;;  %v600_v38 = vld [vmem:[%s941_s0 + $0x50] sm:$0xff] }
   0x9   :  { %v89_v34 = vadd.f32 %v88_v28, %v557_v24  ;;  %v607_v41 = vld [vmem:[%s941_s0 + $0xc0] sm:$0xff]  ;;  %v612_v42 = vld [vmem:[%s941_s0 + $0x128] sm:$0xff]  ;;  %v618_v44 = vld [vmem:[%s941_s0 + $0x58] sm:$0xff] }
   0xa   :  { %v60_v18 = vadd.f32 %v59_v14, %v506_v10  ;;  %v75_v27 = vadd.f32 %v74_v21, %v530_v17  ;;  %958 = vst [vmem:[#allocation2_spill] sm:$0xff] %v618_v44  ;;  %v625_v47 = vld [vmem:[%s941_s0 + $0xc8] sm:$0xff]  ;;  %v630_v48 = vld [vmem:[%s941_s0 + $0x130] sm:$0xff]  ;;  %v636_v50 = vld [vmem:[%s941_s0 + $0x60] sm:$0xff] }
   0xb   :  { %v90_v40 = vadd.f32 %v89_v34, %v576_v30  ;;  %959 = vst [vmem:[#allocation3_spill] sm:$0xff] %v636_v50  ;;  %v643_v53 = vld [vmem:[%s941_s0 + $0xd0] sm:$0xff]  ;;  %v648_v54 = vld [vmem:[%s941_s0 + $0x138] sm:$0xff]  ;;  %v654_v56 = vld [vmem:[%s941_s0 + $0x68] sm:$0xff] }
   0xc   :  { %v61_v25 = vadd.f32 %v60_v18, %v524_v15  ;;  %v76_v33 = vadd.f32 %v75_v27, %v547_v22  ;;  %960 = vst [vmem:[#allocation4_spill] sm:$0xff] %v654_v56  ;;  %v661_v59 = vld [vmem:[%s941_s0 + $0xd8] sm:$0xff]  ;;  %v666_v60 = vld [vmem:[%s941_s0 + $0x140] sm:$0xff]  ;;  %v672_v62 = vld [vmem:[%s941_s0 + $0x70] sm:$0xff] }
   0xd   :  { %v91_v46 = vadd.f32 %v90_v40, %v594_v36  ;;  %961 = vst [vmem:[#allocation5_spill] sm:$0xff] %v661_v59  ;;  %962 = vst [vmem:[#allocation6_spill] sm:$0xff] %v672_v62  ;;  %v679_v5 = vld [vmem:[%s941_s0 + $0xe0] sm:$0xff]  ;;  %v684_v9 = vld [vmem:[%s941_s0 + $0x148] sm:$0xff] }
   0xe   :  { %v62_v31 = vadd.f32 %v61_v25, %v536_v19  ;;  %v77_v39 = vadd.f32 %v76_v33, %v571_v29  ;;  %963 = vst [vmem:[#allocation7_spill] sm:$0xff] %v679_v5  ;;  %v690_v14 = vld [vmem:[%s941_s0 + $0x78] sm:$0xff]  ;;  %v697_v21 = vld [vmem:[%s941_s0 + $0xe8] sm:$0xff]  ;;  %v702_v25 = vld [vmem:[%s941_s0 + $0x150] sm:$0xff] }
   0xf   :  { %v92_v52 = vadd.f32 %v91_v46, %v612_v42  ;;  %964 = vst [vmem:[#allocation8_spill] sm:$0xff] %v690_v14  ;;  %965 = vst [vmem:[#allocation9_spill] sm:$0xff] %v697_v21  ;;  %v710_v33 = vld [vmem:[%s941_s0 + $0xf0] sm:$0xff]  ;;  %v715_v34 = vld [vmem:[%s941_s0 + $0x158] sm:$0xff] }
  0x10   :  { %v63_v37 = vadd.f32 %v62_v31, %v563_v26  ;;  %v78_v45 = vadd.f32 %v77_v39, %v589_v35  ;;  %966 = vst [vmem:[#allocation10_spill] sm:$0xff] %v710_v33  ;;  %967 = vst [vmem:[#allocation11_spill] sm:$0xff] %v715_v34 }
  0x11   :  { %v93_v58 = vadd.f32 %v92_v52, %v630_v48  ;;  %v737_v52 = vld [vmem:[%s941_s0 + $0x168] sm:$0xff] }
  0x12   :  { %v64_v43 = vadd.f32 %v63_v37, %v582_v32  ;;  %v79_v51 = vadd.f32 %v78_v45, %v607_v41  ;;  %v728_v45 = vld [vmem:[%s941_s0 + $0x160] sm:$0xff]  ;;  %970 = vst [vmem:[#allocation14_spill] sm:$0xff] %v737_v52 }
  0x13   :  { %v94_v3 = vadd.f32 %v93_v58, %v648_v54  ;;  %969 = vst [vmem:[#allocation13_spill] sm:$0xff] %v728_v45 }
  0x14   :  { %v65_v49 = vadd.f32 %v64_v43, %v600_v38  ;;  %v80_v57 = vadd.f32 %v79_v51, %v625_v47  ;;  %v723_v43 = vld [vmem:[%s941_s0 + $0xf8] sm:$0xff] }
  0x15   :  { %v95_v18 = vadd.f32 %v94_v3, %v666_v60  ;;  %968 = vst [vmem:[#allocation12_spill] sm:$0xff] %v723_v43 }
  0x16   :  { %v66_v55 = vadd.f32 %v65_v49, %v618_v44  ;;  %v81_v63 = vadd.f32 %v80_v57, %v643_v53 }
  0x17   :  { %v96_v31 = vadd.f32 %v95_v18, %v684_v9 }
  0x18   :  { %v67_v61 = vadd.f32 %v66_v55, %v636_v50  ;;  %v82_v16 = vadd.f32 %v81_v63, %v661_v59 }
  0x19   :  { %v97_v40 = vadd.f32 %v96_v31, %v702_v25 }
  0x1a   :  { %v68_v12 = vadd.f32 %v67_v61, %v654_v56  ;;  %v83_v28 = vadd.f32 %v82_v16, %v679_v5 }
  0x1b   :  { %v98_v51 = vadd.f32 %v97_v40, %v715_v34 }
  0x1c   :  { %v69_v27 = vadd.f32 %v68_v12, %v672_v62  ;;  %v84_v39 = vadd.f32 %v83_v28, %v697_v21 }
  0x1d   :  { %v99_v3 = vadd.f32 %v98_v51, %v728_v45 }
  0x1e   :  { %v70_v37 = vadd.f32 %v69_v27, %v690_v14  ;;  %v85_v49 = vadd.f32 %v84_v39, %v710_v33 }
  0x1f   :  { %v100_v27 = vadd.f32 %v99_v3, %v737_v52 }
  0x20   :  { %v730_v46 = vmul.f32 0.0625, %v70_v37  ;;  %v86_v63 = vadd.f32 %v85_v49, %v723_v43 }
  0x22   :  { %v104_v55 = vsub.f32 %v467_v0, %v730_v46  ;;  %v113_v57 = vsub.f32 %v472_v1, %v730_v46  ;;  %v128_v58 = vsub.f32 %v477_v2, %v730_v46  ;;  %v143_v61 = vsub.f32 %v484_v4, %v730_v46  ;;  %v760_v1 = vld [vmem:[%s941_s0 + $0x170] sm:$0xff] }
  0x23   :  { %v751_v12 = vsub.f32 %v490_v6, %v730_v46  ;;  %v755_v0 = vsub.f32 %v506_v10, %v730_v46  ;;  %971 = vst [vmem:[#allocation15_spill] sm:$0xff] %v760_v1  ;;  %v762_v18 = vmul.f32 0.0625, %v86_v63  ;;  %v770_v10 = vld [vmem:[%s941_s0 + $0x178] sm:$0xff]  ;;  %v776_v39 = vsub.f32 %v524_v15, %v730_v46 }
  0x24   :  { %v107_v2 = vmul.f32 %v104_v55, %v104_v55  ;;  %v116_v16 = vmul.f32 %v113_v57, %v113_v57  ;;  %v131_v4 = vmul.f32 %v128_v58, %v128_v58  ;;  %v146_v28 = vmul.f32 %v143_v61, %v143_v61  ;;  %972 = vst [vmem:[#allocation16_spill] sm:$0xff] %v770_v10 }
  0x25   :  { %v161_v6 = vmul.f32 %v751_v12, %v751_v12  ;;  %v176_v37 = vmul.f32 %v755_v0, %v755_v0  ;;  %v780_v40 = vsub.f32 %v536_v19, %v730_v46  ;;  %v101_v49 = vadd.f32 %v100_v27, %v760_v1 }
  0x26   :  { %v117_v31 = vadd.f32 %v116_v16, %v107_v2  ;;  %v105_v51 = vsub.f32 %v495_v7, %v762_v18  ;;  %v114_v63 = vsub.f32 %v500_v8, %v762_v18  ;;  %v129_v3 = vsub.f32 %v511_v11, %v762_v18 }
  0x27   :  { %v144_v15 = vsub.f32 %v518_v13, %v762_v18  ;;  %v159_v16 = vsub.f32 %v530_v17, %v762_v18  ;;  %v174_v19 = vsub.f32 %v547_v22, %v762_v18  ;;  %v102_v27 = vadd.f32 %v101_v49, %v770_v10 }
  0x28   :  { %v132_v2 = vadd.f32 %v131_v4, %v117_v31  ;;  %v108_v43 = vmul.f32 %v105_v51, %v104_v55  ;;  %v110_v7 = vmul.f32 %v105_v51, %v105_v51  ;;  %v118_v14 = vmul.f32 %v114_v63, %v113_v57 }
  0x29   :  { %v122_v1 = vmul.f32 %v114_v63, %v114_v63  ;;  %v133_v8 = vmul.f32 %v129_v3, %v128_v58  ;;  %v137_v33 = vmul.f32 %v129_v3, %v129_v3  ;;  %v796_v11 = vmul.f32 0.0625, %v102_v27 }
  0x2a   :  { %v147_v62 = vadd.f32 %v146_v28, %v132_v2  ;;  %v119_v4 = vadd.f32 %v118_v14, %v108_v43  ;;  %v148_v31 = vmul.f32 %v144_v15, %v143_v61  ;;  %v152_v13 = vmul.f32 %v144_v15, %v144_v15 }
  0x2b   :  { %v123_v52 = vadd.f32 %v122_v1, %v110_v7  ;;  %v163_v17 = vmul.f32 %v159_v16, %v751_v12  ;;  %v167_v56 = vmul.f32 %v159_v16, %v159_v16  ;;  %v106_v22 = vsub.f32 %v541_v20, %v796_v11 }
  0x2c   :  { %v162_v21 = vadd.f32 %v161_v6, %v147_v62  ;;  %v115_v49 = vsub.f32 %v552_v23, %v796_v11  ;;  %v130_v10 = vsub.f32 %v557_v24, %v796_v11  ;;  %v134_v28 = vadd.f32 %v133_v8, %v119_v4 }
  0x2d   :  { %v138_v2 = vadd.f32 %v137_v33, %v123_v52  ;;  %v145_v14 = vsub.f32 %v576_v30, %v796_v11  ;;  %v160_v62 = vsub.f32 %v594_v36, %v796_v11  ;;  %v175_v43 = vsub.f32 %v612_v42, %v796_v11 }
  0x2e   :  { %v109_v1 = vmul.f32 %v106_v22, %v104_v55  ;;  %v111_v6 = vmul.f32 %v106_v22, %v105_v51  ;;  %v112_v20 = vmul.f32 %v106_v22, %v106_v22  ;;  %v120_v27 = vmul.f32 %v115_v49, %v113_v57 }
  0x2f   :  { %v124_v7 = vmul.f32 %v115_v49, %v114_v63  ;;  %v126_v23 = vmul.f32 %v115_v49, %v115_v49  ;;  %v135_v45 = vmul.f32 %v130_v10, %v128_v58  ;;  %v139_v5 = vmul.f32 %v130_v10, %v129_v3 }
  0x30   :  { %v121_v24 = vadd.f32 %v120_v27, %v109_v1  ;;  %v141_v8 = vmul.f32 %v130_v10, %v130_v10  ;;  %v149_v33 = vadd.f32 %v148_v31, %v134_v28  ;;  %v150_v52 = vmul.f32 %v145_v14, %v143_v61 }
  0x31   :  { %v125_v4 = vadd.f32 %v124_v7, %v111_v6  ;;  %v127_v30 = vadd.f32 %v126_v23, %v112_v20  ;;  %v153_v50 = vadd.f32 %v152_v13, %v138_v2  ;;  %v154_v34 = vmul.f32 %v145_v14, %v144_v15 }
  0x32   :  { %v136_v36 = vadd.f32 %v135_v45, %v121_v24  ;;  %v156_v59 = vmul.f32 %v145_v14, %v145_v14  ;;  %v164_v44 = vadd.f32 %v163_v17, %v149_v33  ;;  %v165_v42 = vmul.f32 %v160_v62, %v751_v12 }
  0x33   :  { %v140_v55 = vadd.f32 %v139_v5, %v125_v4  ;;  %v142_v51 = vadd.f32 %v141_v8, %v127_v30  ;;  %v168_v57 = vadd.f32 %v167_v56, %v153_v50  ;;  %v169_v63 = vmul.f32 %v160_v62, %v159_v16 }
  0x34   :  { %v151_v22 = vadd.f32 %v150_v52, %v136_v36  ;;  %v171_v58 = vmul.f32 %v160_v62, %v160_v62  ;;  %v177_v3 = vadd.f32 %v176_v37, %v162_v21  ;;  %v178_v10 = vmul.f32 %v174_v19, %v755_v0 }
  0x35   :  { %v155_v31 = vadd.f32 %v154_v34, %v140_v55  ;;  %v157_v61 = vadd.f32 %v156_v59, %v142_v51  ;;  %v180_v49 = vmul.f32 %v175_v43, %v755_v0  ;;  %v182_v13 = vmul.f32 %v174_v19, %v174_v19 }
  0x36   :  { %v166_v15 = vadd.f32 %v165_v42, %v151_v22  ;;  %v179_v45 = vadd.f32 %v178_v10, %v164_v44  ;;  %v184_v28 = vmul.f32 %v175_v43, %v174_v19  ;;  %v186_v17 = vmul.f32 %v175_v43, %v175_v43 }
  0x37   :  { %v170_v2 = vadd.f32 %v169_v63, %v155_v31  ;;  %v172_v12 = vadd.f32 %v171_v58, %v157_v61  ;;  %v183_v5 = vadd.f32 %v182_v13, %v168_v57  ;;  %v189_v50 = vsub.f32 %v571_v29, %v762_v18 }
  0x38   :  { %v181_v56 = vadd.f32 %v180_v49, %v166_v15  ;;  %v190_v21 = vsub.f32 %v630_v48, %v796_v11  ;;  %v191_v59 = vmul.f32 %v776_v39, %v776_v39  ;;  %v204_v34 = vsub.f32 %v589_v35, %v762_v18 }
  0x39   :  { %v185_v0 = vadd.f32 %v184_v28, %v170_v2  ;;  %v187_v44 = vadd.f32 %v186_v17, %v172_v12  ;;  %v193_v37 = vmul.f32 %v189_v50, %v776_v39  ;;  %v197_v16 = vmul.f32 %v189_v50, %v189_v50 }
  0x3a   :  { %v192_v19 = vadd.f32 %v191_v59, %v177_v3  ;;  %v195_v14 = vmul.f32 %v190_v21, %v776_v39  ;;  %v199_v62 = vmul.f32 %v190_v21, %v189_v50  ;;  %v201_v29 = vmul.f32 %v190_v21, %v190_v21 }
  0x3b   :  { %v198_v43 = vadd.f32 %v197_v16, %v183_v5  ;;  %v205_v48 = vsub.f32 %v648_v54, %v796_v11  ;;  %v206_v1 = vmul.f32 %v780_v40, %v780_v40  ;;  %v218_v35 = vsub.f32 %v563_v26, %v730_v46 }
  0x3c   :  { %v194_v6 = vadd.f32 %v193_v37, %v179_v45  ;;  %v196_v20 = vadd.f32 %v195_v14, %v181_v56  ;;  %v202_v27 = vadd.f32 %v201_v29, %v187_v44  ;;  %v208_v7 = vmul.f32 %v204_v34, %v780_v40  ;;  %v973_v44 = vld [vmem:[#allocation2_spill] sm:$0xff]  ;;  %v974_v37 = vld [vmem:[#allocation5_spill] sm:$0xff] }
  0x3d   :  { %v200_v23 = vadd.f32 %v199_v62, %v185_v0  ;;  %v207_v24 = vadd.f32 %v206_v1, %v192_v19  ;;  %v210_v39 = vmul.f32 %v205_v48, %v780_v40  ;;  %v212_v8 = vmul.f32 %v204_v34, %v204_v34 }
  0x3e   :  { %v214_v33 = vmul.f32 %v205_v48, %v204_v34  ;;  %v216_v52 = vmul.f32 %v205_v48, %v205_v48  ;;  %v219_v54 = vsub.f32 %v607_v41, %v762_v18  ;;  %v220_v4 = vsub.f32 %v666_v60, %v796_v11 }
  0x3f   :  { %v213_v30 = vadd.f32 %v212_v8, %v198_v43  ;;  %v221_v26 = vmul.f32 %v218_v35, %v218_v35  ;;  %v209_v36 = vadd.f32 %v208_v7, %v194_v6  ;;  %v233_v40 = vsub.f32 %v582_v32, %v730_v46 }
  0x40   :  { %v217_v42 = vadd.f32 %v216_v52, %v202_v27  ;;  %v227_v55 = vmul.f32 %v219_v54, %v219_v54  ;;  %v223_v57 = vmul.f32 %v219_v54, %v218_v35  ;;  %v231_v63 = vmul.f32 %v220_v4, %v220_v4  ;;  %v976_v27 = vld [vmem:[#allocation3_spill] sm:$0xff] }
  0x41   :  { %v222_v51 = vadd.f32 %v221_v26, %v207_v24  ;;  %v211_v22 = vadd.f32 %v210_v39, %v196_v20  ;;  %v215_v58 = vadd.f32 %v214_v33, %v200_v23  ;;  %v234_v41 = vsub.f32 %v625_v47, %v762_v18  ;;  %v977_v39 = vld [vmem:[#allocation7_spill] sm:$0xff] }
  0x42   :  { %v228_v3 = vadd.f32 %v227_v55, %v213_v30  ;;  %v225_v10 = vmul.f32 %v220_v4, %v218_v35  ;;  %v232_v31 = vadd.f32 %v231_v63, %v217_v42  ;;  %v235_v60 = vsub.f32 %v684_v9, %v796_v11  ;;  %v979_v55 = vld [vmem:[#allocation4_spill] sm:$0xff] }
  0x43   :  { %v236_v61 = vmul.f32 %v233_v40, %v233_v40  ;;  %v229_v49 = vmul.f32 %v220_v4, %v219_v54  ;;  %v242_v13 = vmul.f32 %v234_v41, %v234_v41  ;;  %v248_v15 = vsub.f32 %v600_v38, %v730_v46  ;;  %v978_v4 = vld [vmem:[#allocation13_spill] sm:$0xff] }
  0x44   :  { %v249_v32 = vsub.f32 %v643_v53, %v762_v18  ;;  %v224_v45 = vadd.f32 %v223_v57, %v209_v36  ;;  %v246_v17 = vmul.f32 %v235_v60, %v235_v60  ;;  %v238_v2 = vmul.f32 %v234_v41, %v233_v40 }
  0x45   :  { %v237_v28 = vadd.f32 %v236_v61, %v222_v51  ;;  %v243_v12 = vadd.f32 %v242_v13, %v228_v3  ;;  %v250_v47 = vsub.f32 %v702_v25, %v796_v11  ;;  %v251_v5 = vmul.f32 %v248_v15, %v248_v15  ;;  %v975_v25 = vld [vmem:[#allocation11_spill] sm:$0xff] }
  0x46   :  { %v226_v50 = vadd.f32 %v225_v10, %v211_v22  ;;  %v247_v9 = vadd.f32 %v246_v17, %v232_v31  ;;  %v230_v56 = vadd.f32 %v229_v49, %v215_v58  ;;  %v240_v21 = vmul.f32 %v235_v60, %v233_v40  ;;  %v980_v22 = vld [vmem:[#allocation9_spill] sm:$0xff]  ;;  %v981_v31 = vld [vmem:[#allocation14_spill] sm:$0xff] }
  0x47   :  { %v244_v59 = vmul.f32 %v235_v60, %v234_v41  ;;  %v257_v34 = vmul.f32 %v249_v32, %v249_v32  ;;  %v252_v0 = vadd.f32 %v251_v5, %v237_v28  ;;  %v261_v38 = vmul.f32 %v250_v47, %v250_v47  ;;  %v982_v17 = vld [vmem:[#allocation6_spill] sm:$0xff] }
  0x48   :  { %v263_v53 = vsub.f32 %v973_v44, %v730_v46  ;;  %v264_v16 = vsub.f32 %v974_v37, %v762_v18  ;;  %v239_v19 = vadd.f32 %v238_v2, %v224_v45  ;;  %v253_v14 = vmul.f32 %v249_v32, %v248_v15 }
  0x49   :  { %v258_v62 = vadd.f32 %v257_v34, %v243_v12  ;;  %v265_v29 = vsub.f32 %v975_v25, %v796_v11  ;;  %v262_v43 = vadd.f32 %v261_v38, %v247_v9  ;;  %v241_v35 = vadd.f32 %v240_v21, %v226_v50  ;;  %v983_v12 = vld [vmem:[#allocation10_spill] sm:$0xff] }
  0x4a   :  { %v266_v48 = vmul.f32 %v263_v53, %v263_v53  ;;  %v272_v1 = vmul.f32 %v264_v16, %v264_v16  ;;  %v255_v6 = vmul.f32 %v250_v47, %v248_v15  ;;  %v278_v7 = vsub.f32 %v976_v27, %v730_v46 }
  0x4b   :  { %v276_v20 = vmul.f32 %v265_v29, %v265_v29  ;;  %v279_v8 = vsub.f32 %v977_v39, %v762_v18  ;;  %v245_v33 = vadd.f32 %v244_v59, %v230_v56  ;;  %v254_v52 = vadd.f32 %v253_v14, %v239_v19  ;;  %v984_v59 = vld [vmem:[#allocation15_spill] sm:$0xff] }
  0x4c   :  { %v267_v23 = vadd.f32 %v266_v48, %v252_v0  ;;  %v273_v24 = vadd.f32 %v272_v1, %v258_v62  ;;  %v259_v54 = vmul.f32 %v250_v47, %v249_v32  ;;  %v280_v30 = vsub.f32 %v978_v4, %v796_v11 }
  0x4d   :  { %v277_v26 = vadd.f32 %v276_v20, %v262_v43  ;;  %v281_v36 = vmul.f32 %v278_v7, %v278_v7  ;;  %v287_v42 = vmul.f32 %v279_v8, %v279_v8  ;;  %v293_v51 = vsub.f32 %v979_v55, %v730_v46 }
  0x4e   :  { %v256_v57 = vadd.f32 %v255_v6, %v241_v35  ;;  %v268_v63 = vmul.f32 %v264_v16, %v263_v53  ;;  %v291_v40 = vmul.f32 %v280_v30, %v280_v30  ;;  %v294_v58 = vsub.f32 %v980_v22, %v762_v18 }
  0x4f   :  { %v270_v3 = vmul.f32 %v265_v29, %v263_v53  ;;  %v282_v41 = vadd.f32 %v281_v36, %v267_v23  ;;  %v288_v10 = vadd.f32 %v287_v42, %v273_v24  ;;  %v295_v60 = vsub.f32 %v981_v31, %v796_v11  ;;  %v985_v53 = vld [vmem:[#allocation8_spill] sm:$0xff] }
  0x50   :  { %v296_v61 = vmul.f32 %v293_v51, %v293_v51  ;;  %v260_v49 = vadd.f32 %v259_v54, %v245_v33  ;;  %v274_v13 = vmul.f32 %v265_v29, %v264_v16  ;;  %v292_v15 = vadd.f32 %v291_v40, %v277_v26  ;;  %v986_v16 = vld [vmem:[#allocation12_spill] sm:$0xff] }
  0x51   :  { %v302_v32 = vmul.f32 %v294_v58, %v294_v58  ;;  %v306_v28 = vmul.f32 %v295_v60, %v295_v60  ;;  %v308_v2 = vsub.f32 %v982_v17, %v730_v46  ;;  %v309_v47 = vsub.f32 %v983_v12, %v762_v18  ;;  %v987_v29 = vld [vmem:[#allocation16_spill] sm:$0xff] }
  0x52   :  { %v297_v45 = vadd.f32 %v296_v61, %v282_v41  ;;  %v269_v5 = vadd.f32 %v268_v63, %v254_v52  ;;  %v271_v50 = vadd.f32 %v270_v3, %v256_v57  ;;  %v283_v56 = vmul.f32 %v279_v8, %v278_v7 }
  0x53   :  { %v303_v9 = vadd.f32 %v302_v32, %v288_v10  ;;  %v285_v21 = vmul.f32 %v280_v30, %v278_v7  ;;  %v310_v34 = vsub.f32 %v984_v59, %v796_v11  ;;  %v311_v0 = vmul.f32 %v308_v2, %v308_v2 }
  0x54   :  { %v307_v38 = vadd.f32 %v306_v28, %v292_v15  ;;  %v317_v44 = vmul.f32 %v309_v47, %v309_v47  ;;  %v323_v37 = vsub.f32 %v985_v53, %v730_v46  ;;  %v324_v19 = vsub.f32 %v986_v16, %v762_v18 }
  0x55   :  { %v275_v14 = vadd.f32 %v274_v13, %v260_v49  ;;  %v289_v62 = vmul.f32 %v280_v30, %v279_v8  ;;  %v312_v25 = vadd.f32 %v311_v0, %v297_v45  ;;  %v325_v43 = vsub.f32 %v987_v29, %v796_v11 }
  0x56   :  { %v318_v48 = vadd.f32 %v317_v44, %v303_v9  ;;  %v321_v1 = vmul.f32 %v310_v34, %v310_v34  ;;  %v326_v35 = vmul.f32 %v323_v37, %v323_v37  ;;  %v284_v6 = vadd.f32 %v283_v56, %v269_v5 }
  0x57   :  { %v286_v20 = vadd.f32 %v285_v21, %v271_v50  ;;  %v332_v27 = vmul.f32 %v324_v19, %v324_v19  ;;  %v298_v7 = vmul.f32 %v294_v58, %v293_v51  ;;  %v300_v23 = vmul.f32 %v295_v60, %v293_v51 }
  0x58   :  { %v322_v24 = vadd.f32 %v321_v1, %v307_v38  ;;  %v327_v39 = vadd.f32 %v326_v35, %v312_v25  ;;  %v290_v33 = vadd.f32 %v289_v62, %v275_v14  ;;  %v304_v52 = vmul.f32 %v295_v60, %v294_v58 }
  0x59   :  { %v333_v54 = vadd.f32 %v332_v27, %v318_v48  ;;  %v336_v4 = vmul.f32 %v325_v43, %v325_v43  ;;  %v299_v36 = vadd.f32 %v298_v7, %v284_v6  ;;  %v301_v42 = vadd.f32 %v300_v23, %v286_v20 }
  0x5a   :  { %v338_v26 = vmul.f32 0.06666667, %v327_v39  ;;  %v313_v55 = vmul.f32 %v309_v47, %v308_v2  ;;  %v315_v57 = vmul.f32 %v310_v34, %v308_v2  ;;  %v305_v63 = vadd.f32 %v304_v52, %v290_v33 }
  0x5b   :  { %v337_v8 = vadd.f32 %v336_v4, %v322_v24  ;;  %v341_v30 = vmul.f32 0.06666667, %v333_v54  ;;  %v319_v40 = vmul.f32 %v310_v34, %v309_v47  ;;  %v330_v31 = vmul.f32 %v325_v43, %v323_v37 }
  0x5c   :  { %v314_v10 = vadd.f32 %v313_v55, %v299_v36  ;;  %v316_v51 = vadd.f32 %v315_v57, %v301_v42  ;;  %v328_v49 = vmul.f32 %v324_v19, %v323_v37  ;;  %v334_v58 = vmul.f32 %v325_v43, %v324_v19 }
  0x5d   :  { %v343_v22 = vmul.f32 0.06666667, %v337_v8  ;;  %v344_v3 = vadd.f32 %v341_v30, %v338_v26  ;;  %v320_v61 = vadd.f32 %v319_v40, %v305_v63  ;;  %v377_v7 = vmul.f32 %v730_v46, %v730_v46 }
  0x5e   :  { %v331_v60 = vadd.f32 %v330_v31, %v316_v51  ;;  %v329_v13 = vadd.f32 %v328_v49, %v314_v10  ;;  %v379_v23 = vmul.f32 %v762_v18, %v730_v46  ;;  %v381_v24 = vmul.f32 %v796_v11, %v730_v46 }
  0x5f   :  { %v345_v41 = vadd.f32 %v344_v3, %v343_v22  ;;  %v335_v15 = vadd.f32 %v334_v58, %v320_v61  ;;  %v383_v39 = vmul.f32 %v762_v18, %v762_v18  ;;  %v385_v33 = vmul.f32 %v796_v11, %v762_v18 }
  0x60   :  { %v340_v32 = vmul.f32 0.06666667, %v331_v60  ;;  %v339_v45 = vmul.f32 0.06666667, %v329_v13  ;;  %v387_v52 = vmul.f32 %v796_v11, %v796_v11 }
  0x61   :  { %448 = vrcp.f32 %v345_v41  ;;  %v342_v28 = vmul.f32 0.06666667, %v335_v15  ;;  %v354_v17 = vmul.f32 0.001, %v345_v41 }
  0x6b   :  { %v449_v2 = vpop.eup %448 }
  0x6c   :  { %v350_v12 = vmul.f32 %v449_v2, %v340_v32  ;;  %v351_v47 = vmul.f32 %v449_v2, %v341_v30  ;;  %v348_v5 = vmul.f32 %v449_v2, %v338_v26  ;;  %v349_v50 = vmul.f32 %v449_v2, %v339_v45 }
  0x6d   :  { %v352_v9 = vmul.f32 %v449_v2, %v342_v28  ;;  %v353_v56 = vmul.f32 %v449_v2, %v343_v22 }
  0x6e   :  { %v356_v21 = vadd.f32 %v354_v17, %v351_v47  ;;  %v355_v53 = vadd.f32 %v354_v17, %v348_v5  ;;  %v380_v4 = vadd.f32 %v379_v23, %v349_v50  ;;  %v382_v26 = vadd.f32 %v381_v24, %v350_v12 }
  0x6f   :  { %v357_v59 = vadd.f32 %v354_v17, %v353_v56  ;;  %v359_v34 = vmul.f32 %v352_v9, %v352_v9  ;;  %v363_v0 = vmul.f32 %v352_v9, %v350_v12  ;;  %v367_v38 = vmul.f32 %v352_v9, %v349_v50 }
  0x70   :  { %v368_v44 = vmul.f32 %v356_v21, %v350_v12  ;;  %v378_v54 = vadd.f32 %v377_v7, %v355_v53  ;;  %v384_v8 = vadd.f32 %v383_v39, %v356_v21  ;;  %v386_v30 = vadd.f32 %v385_v33, %v352_v9 }
  0x71   :  { %v358_v37 = vmul.f32 %v357_v59, %v356_v21  ;;  %v362_v16 = vmul.f32 %v357_v59, %v349_v50  ;;  %v388_v36 = vadd.f32 %v387_v52, %v357_v59 }
  0x72   :  { %v369_v19 = vsub.f32 %v367_v38, %v368_v44 }
  0x73   :  { %v360_v14 = vsub.f32 %v358_v37, %v359_v34  ;;  %v364_v62 = vsub.f32 %v362_v16, %v363_v0 }
  0x74   :  { %v370_v43 = vmul.f32 %v369_v19, %v350_v12 }
  0x75   :  { %v361_v25 = vmul.f32 %v360_v14, %v355_v53  ;;  %v365_v29 = vmul.f32 %v364_v62, %v349_v50 }
  0x77   :  { %v366_v48 = vsub.f32 %v361_v25, %v365_v29 }
  0x79   :  { %v371_v1 = vadd.f32 %v370_v43, %v366_v48 }
  0x7b   :  { %450 = vlog2.f32 %v371_v1 }
  0x85   :  { %v451_v35 = vpop.eup %450 }
  0x86   :  { %v373_v6 = vmul.f32 0.6931472, %v451_v35 }
  0x88   :  { %v374_v20 = vmul.f32 -0.25, %v373_v6 }
  0x8a   :  { %v375_v27 = vmul.f32 1.442695, %v374_v20 }
  0x8c   :  { %452 = vpow2.f32 %v375_v27 }
  0x96   :  { %v453_v42 = vpop.eup %452 }
  0x97   :  { %v389_v55 = vmul.f32 %v453_v42, %v378_v54  ;;  %447 = vst [vmem:[%s942_s1 + $0x78] sm:$0xff] %v453_v42  ;;  %v391_v57 = vmul.f32 %v453_v42, %v380_v4  ;;  %v394_v63 = vmul.f32 %v453_v42, %v382_v26  ;;  %v397_v40 = vmul.f32 %v453_v42, %v730_v46 }
  0x98   :  { %v402_v22 = vmul.f32 %v453_v42, %v384_v8  ;;  %v405_v3 = vmul.f32 %v453_v42, %v386_v30  ;;  %v408_v41 = vmul.f32 %v453_v42, %v762_v18  ;;  %v415_v10 = vmul.f32 %v453_v42, %v388_v36 }
  0x99   :  { %390 = vst [vmem:[%s942_s1] sm:$0xff] %v389_v55  ;;  %433 = vst [vmem:[%s942_s1 + $0x8] sm:$0xff] %v391_v57  ;;  %v418_v46 = vmul.f32 %v453_v42, %v796_v11 }
  0x9a   :  { %436 = vst [vmem:[%s942_s1 + $0x20] sm:$0xff] %v391_v57  ;;  %434 = vst [vmem:[%s942_s1 + $0x10] sm:$0xff] %v394_v63 }
  0x9b   :  { %440 = vst [vmem:[%s942_s1 + $0x40] sm:$0xff] %v394_v63  ;;  %435 = vst [vmem:[%s942_s1 + $0x18] sm:$0xff] %v397_v40 }
  0x9c   :  { %444 = vst [vmem:[%s942_s1 + $0x60] sm:$0xff] %v397_v40  ;;  %437 = vst [vmem:[%s942_s1 + $0x28] sm:$0xff] %v402_v22 }
  0x9d   :  { %438 = vst [vmem:[%s942_s1 + $0x30] sm:$0xff] %v405_v3  ;;  %441 = vst [vmem:[%s942_s1 + $0x48] sm:$0xff] %v405_v3 }
  0x9e   :  { %439 = vst [vmem:[%s942_s1 + $0x38] sm:$0xff] %v408_v41  ;;  %445 = vst [vmem:[%s942_s1 + $0x68] sm:$0xff] %v408_v41 }
  0x9f   :  { %442 = vst [vmem:[%s942_s1 + $0x50] sm:$0xff] %v415_v10  ;;  %443 = vst [vmem:[%s942_s1 + $0x58] sm:$0xff] %v418_v46 }
  0xa0   :  { %446 = vst [vmem:[%s942_s1 + $0x70] sm:$0xff] %v418_v46 }

</bundles_post_ra>
